<compile_context>
chip_gen: v7x
topology: tpu7x:2x2x1
jax: 0.10.0
libtpu: 0.0.40
codegen_flags: <defaults>
</compile_context>

<pallas_src>
import math

import jax
import jax.numpy as jnp
from jax.experimental import pallas as pl
from jax.experimental.pallas import tpu as pltpu

# ----------------------- model hyper-parameters (small) -----------------------
N_LAYERS = 2
N_HEADS = 4
D_MODEL = 32
FF_HIDDEN = 64
VOCAB_SIZE = 50
MAX_LEN = 16
BATCH = 2
SEQ = 8
LN_EPS = 1e-5

B_TILE = 2                       # sequences per grid step (== BATCH for the demo;
                                 # pick a multiple of 8 when scaling the batch up)


def _round_up(x, m):
    return (x + m - 1) // m * m


EMB_ROWS = _round_up(VOCAB_SIZE, 8)            # pad vocab rows to a sublane multiple
W_IN_COLS = 3 * D_MODEL + D_MODEL + FF_HIDDEN  # [wqkv | wo | w1] = 96+32+64 = 192
N_VEC_ROWS = 8                                 # bqkv, bo, b1, b2, ln1w, ln1b, ln2w, ln2b
MISC_ROWS = MAX_LEN + 8                        # pe rows + fc weight row + fc bias row
HD = D_MODEL // N_HEADS


def _layer_norm(x, w, b):
    # fused statistics: one pass for mean and mean(x^2), var = E[x^2] - mean^2
    mu = jnp.mean(x, axis=-1, keepdims=True)
    ms = jnp.mean(x * x, axis=-1, keepdims=True)
    var = ms - mu * mu
    return (x - mu) * jax.lax.rsqrt(var + LN_EPS) * w + b


# ------------------------------ fused forward kernel ---------------------------
def fused_forward_kernel(tok_ref, tokcol_ref, emb_ref, w_in_ref, w2_ref,
                         vec_ref, misc_ref, out_ref):
    Bk, T = tok_ref.shape
    BT = Bk * T
    Vp, D = emb_ref.shape
    H = N_HEADS
    hd = D // H
    FF = FF_HIDDEN
    scale = 1.0 / math.sqrt(hd)

    tok = tok_ref[...]                       # (Bk, T)   int32
    tok_col = tokcol_ref[...]                # (Bk*T, 1) int32

    # ---- embedding gather as a bf16 one-hot matmul (one-hot is exact in bf16) ----
    vocab_ids = jax.lax.broadcasted_iota(jnp.int32, (BT, Vp), 1)
    one_hot = (tok_col == vocab_ids).astype(jnp.bfloat16)              # (BT, Vp)
    x = jnp.dot(one_hot, emb_ref[...],
                preferred_element_type=jnp.float32)                    # (BT, D) f32

    # ---- sinusoidal positional encoding: broadcast add over batch ----
    pe_t = misc_ref[0:T, 0:D]                                          # (T, D) f32
    x = (x.reshape(Bk, T, D) + pe_t).reshape(BT, D)
    # TODO(synk): dropout skipped (inference / eval semantics).

    # ---- key-padding mask (reference masks token id 0), tiled over heads once ----
    pad = tok == 0                                                     # (Bk, T)
    mb = jnp.where(pad, -1e9, 0.0).astype(jnp.float32).reshape(Bk, 1, T)
    mask_hb = jnp.concatenate([mb] * H, axis=0)                        # (H*Bk, 1, T)
    valid = (tok != 0).astype(jnp.float32)                             # (Bk, T)
    lengths = jnp.maximum(jnp.sum(valid, axis=1, keepdims=True), 1.0)  # (Bk, 1)

    # ---- N_LAYERS post-norm transformer encoder layers (static unroll) ----
    for l in range(N_LAYERS):
        # static slices from the packed slabs
        wqkv = w_in_ref[l, :, 0:3 * D]                  # (D, 3D)  bf16, head-major cols
        wo = w_in_ref[l, :, 3 * D:4 * D]                # (D, D)   bf16
        w1 = w_in_ref[l, :, 4 * D:4 * D + FF]           # (D, FF)  bf16
        w2 = w2_ref[l]                                  # (FF, D)  bf16
        bqkv = vec_ref[l, 0:1, 0:3 * D]                 # (1, 3D)  f32
        bo = vec_ref[l, 1:2, 0:D]
        b1 = vec_ref[l, 2:3, 0:FF]
        b2 = vec_ref[l, 3:4, 0:D]
        ln1w = vec_ref[l, 4:5, 0:D]
        ln1b = vec_ref[l, 5:6, 0:D]
        ln2w = vec_ref[l, 6:7, 0:D]
        ln2b = vec_ref[l, 7:8, 0:D]

        # fused QKV projection; columns are grouped per head as [q_h | k_h | v_h]
        qkv = jnp.dot(x.astype(jnp.bfloat16), wqkv,
                      preferred_element_type=jnp.float32) + bqkv       # (BT, 3D) f32
        qkv3 = qkv.reshape(Bk, T, 3 * D)

        # heads -> leading batch axis with a single concat (head-major ordering)
        qkv_bh = jnp.concatenate(
            [qkv3[:, :, h * 3 * hd:(h + 1) * 3 * hd] for h in range(H)],
            axis=0)                                                    # (H*Bk, T, 3hd)
        qh = qkv_bh[:, :, 0:hd].astype(jnp.bfloat16)
        kh = qkv_bh[:, :, hd:2 * hd].astype(jnp.bfloat16)
        vh = qkv_bh[:, :, 2 * hd:3 * hd].astype(jnp.bfloat16)

        # ONE batched attention over all (head, batch) pairs -> one softmax pass
        s = jnp.einsum('bqd,bkd->bqk', qh, kh,
                       preferred_element_type=jnp.float32) * scale + mask_hb
        s = s - jnp.max(s, axis=-1, keepdims=True)
        p = jnp.exp(s)
        p = p * pl.reciprocal(jnp.sum(p, axis=-1, keepdims=True), approx=True)
        ctx_bh = jnp.einsum('bqk,bkd->bqd', p.astype(jnp.bfloat16), vh,
                            preferred_element_type=jnp.float32)        # (H*Bk, T, hd)

        # heads back to lanes (single 4-piece lane concat)
        ctx = jnp.concatenate([ctx_bh[h * Bk:(h + 1) * Bk] for h in range(H)],
                              axis=-1)                                 # (Bk, T, D)
        attn = jnp.dot(ctx.reshape(BT, D).astype(jnp.bfloat16), wo,
                       preferred_element_type=jnp.float32) + bo        # (BT, D)

        # residual + LayerNorm 1 (post-norm, PyTorch default) -- f32 math
        y = _layer_norm(x + attn, ln1w, ln1b)

        # feed-forward (relu)
        h1 = jnp.maximum(jnp.dot(y.astype(jnp.bfloat16), w1,
                                 preferred_element_type=jnp.float32) + b1, 0.0)
        h2 = jnp.dot(h1.astype(jnp.bfloat16), w2,
                     preferred_element_type=jnp.float32) + b2

        # residual + LayerNorm 2
        x = _layer_norm(y + h2, ln2w, ln2b)                            # (BT, D)

    # ---- mean pool: UNMASKED sum / clamped non-pad count (matches reference) ----
    sent = jnp.sum(x.reshape(Bk, T, D), axis=1) / lengths              # (Bk, D), exact div

    # ---- classifier head: VPU multiply + lane reduce ----
    fc_row = misc_ref[MAX_LEN:MAX_LEN + 1, 0:D]                        # (1, D)
    fc_b = misc_ref[MAX_LEN + 1:MAX_LEN + 2, 0:1]                      # (1, 1)
    out_ref[...] = jnp.sum(sent * fc_row, axis=-1, keepdims=True) + fc_b   # (Bk, 1)


# ------------------------------------ wrapper -----------------------------------
@jax.jit
def sentiment_transformer_forward(tokens, params):
    """tokens: (B, T) int32 -> logits (B,) float32."""
    B, T = tokens.shape
    assert B % B_TILE == 0
    tok_col = tokens.reshape(B * T, 1)

    in_specs = [
        pl.BlockSpec((B_TILE, T), lambda i: (i, 0)),                      # tok
        pl.BlockSpec((B_TILE * T, 1), lambda i: (i, 0)),                  # tok_col
        pl.BlockSpec((EMB_ROWS, D_MODEL), lambda i: (0, 0)),              # emb (bf16)
        pl.BlockSpec((N_LAYERS, D_MODEL, W_IN_COLS), lambda i: (0, 0, 0)),  # w_in (bf16)
        pl.BlockSpec((N_LAYERS, FF_HIDDEN, D_MODEL), lambda i: (0, 0, 0)),  # w2 (bf16)
        pl.BlockSpec((N_LAYERS, N_VEC_ROWS, 128), lambda i: (0, 0, 0)),   # biases/LN (f32)
        pl.BlockSpec((MISC_ROWS, 128), lambda i: (0, 0)),                 # pe + fc (f32)
    ]
    out_specs = pl.BlockSpec((B_TILE, 1), lambda i: (i, 0))

    logits = pl.pallas_call(
        fused_forward_kernel,
        out_shape=jax.ShapeDtypeStruct((B, 1), jnp.float32),
        grid_spec=pltpu.PrefetchScalarGridSpec(
            num_scalar_prefetch=0,
            grid=(B // B_TILE,),
            in_specs=in_specs,
            out_specs=out_specs,
        ),
        compiler_params=pltpu.CompilerParams(
            dimension_semantics=("parallel",)),   # shards batch tiles across v7x's 2 TCs
    )(tokens, tok_col, params['emb'], params['w_in'], params['w2'],
      params['vecs'], params['misc'])
    return logits[:, 0]


# ------------------------------- params / packing --------------------------------
def make_positional_encoding(max_len, d_model):
    position = jnp.arange(max_len, dtype=jnp.float32)[:, None]
    div_term = jnp.exp(jnp.arange(0, d_model, 2, dtype=jnp.float32)
                       * (-(math.log(10000.0) / d_model)))
    pe = jnp.zeros((max_len, d_model), dtype=jnp.float32)
    pe = pe.at[:, 0::2].set(jnp.sin(position * div_term))
    pe = pe.at[:, 1::2].set(jnp.cos(position * div_term))
    return pe


def init_params(key):
    keys = iter(jax.random.split(key, 64))

    def dense(k, shape, scale=0.05):
        return scale * jax.random.normal(k, shape, dtype=jnp.float32)

    emb = dense(next(keys), (VOCAB_SIZE, D_MODEL), scale=0.1)
    emb = emb.at[1].set(0.0)             # padding_idx=1 row is zero (as in reference)
    emb_padded = jnp.zeros((EMB_ROWS, D_MODEL), jnp.float32).at[:VOCAB_SIZE].set(emb)

    w_in_layers, w2_layers, vec_layers = [], [], []
    for _ in range(N_LAYERS):
        wq = dense(next(keys), (D_MODEL, D_MODEL))
        wk = dense(next(keys), (D_MODEL, D_MODEL))
        wv = dense(next(keys), (D_MODEL, D_MODEL))
        bq = dense(next(keys), (D_MODEL,), scale=0.01)
        bk = dense(next(keys), (D_MODEL,), scale=0.01)
        bv = dense(next(keys), (D_MODEL,), scale=0.01)
        wo = dense(next(keys), (D_MODEL, D_MODEL))
        bo = dense(next(keys), (D_MODEL,), scale=0.01)
        w1 = dense(next(keys), (D_MODEL, FF_HIDDEN))
        b1 = dense(next(keys), (FF_HIDDEN,), scale=0.01)
        w2 = dense(next(keys), (FF_HIDDEN, D_MODEL))
        b2 = dense(next(keys), (D_MODEL,), scale=0.01)

        # repack standard [Q|K|V] columns head-major: per head h -> [q_h | k_h | v_h]
        wqkv_parts, bqkv_parts = [], []
        for h in range(N_HEADS):
            sl = slice(h * HD, (h + 1) * HD)
            wqkv_parts += [wq[:, sl], wk[:, sl], wv[:, sl]]
            bqkv_parts += [bq[sl], bk[sl], bv[sl]]
        wqkv = jnp.concatenate(wqkv_parts, axis=1)        # (D, 3D) head-major
        bqkv = jnp.concatenate(bqkv_parts)                # (3D,)

        w_in_layers.append(jnp.concatenate([wqkv, wo, w1], axis=1))   # (D, 192)
        w2_layers.append(w2)                                          # (FF, D)

        vec = jnp.zeros((N_VEC_ROWS, 128), jnp.float32)
        vec = vec.at[0, :3 * D_MODEL].set(bqkv)
        vec = vec.at[1, :D_MODEL].set(bo)
        vec = vec.at[2, :FF_HIDDEN].set(b1)
        vec = vec.at[3, :D_MODEL].set(b2)
        vec = vec.at[4, :D_MODEL].set(1.0)    # ln1_w
        # row 5: ln1_b = 0
        vec = vec.at[6, :D_MODEL].set(1.0)    # ln2_w
        # row 7: ln2_b = 0
        vec_layers.append(vec)

    pe = make_positional_encoding(MAX_LEN, D_MODEL)
    fc_w = dense(next(keys), (D_MODEL, 1))
    fc_b = dense(next(keys), (1,), scale=0.01)
    misc = jnp.zeros((MISC_ROWS, 128), jnp.float32)
    misc = misc.at[:MAX_LEN, :D_MODEL].set(pe)
    misc = misc.at[MAX_LEN, :D_MODEL].set(fc_w[:, 0])
    misc = misc.at[MAX_LEN + 1, 0].set(fc_b[0])

    return dict(
        emb=emb_padded.astype(jnp.bfloat16),                  # (56, 32)      bf16
        w_in=jnp.stack(w_in_layers).astype(jnp.bfloat16),     # (L, 32, 192)  bf16
        w2=jnp.stack(w2_layers).astype(jnp.bfloat16),         # (L, 64, 32)   bf16
        vecs=jnp.stack(vec_layers),                           # (L, 8, 128)   f32
        misc=misc,                                            # (24, 128)     f32
    )


if __name__ == "__main__":
    key = jax.random.PRNGKey(0)
    k_tok, k_par = jax.random.split(key)

    tokens = jax.random.randint(k_tok, (BATCH, SEQ), 2, VOCAB_SIZE, dtype=jnp.int32)
    # add some padding (token id 0) to exercise the key-padding mask / mean pool
    tokens = tokens.at[0, 6:].set(0)
    tokens = tokens.at[1, 5:].set(0)

    params = init_params(k_par)

    logits = sentiment_transformer_forward(tokens, params)
    logits = jax.block_until_ready(logits)

    assert logits.shape == (BATCH,), logits.shape
    assert bool(jnp.all(jnp.isfinite(logits)))
    print("KERNEL_OK")
</pallas_src>

<mosaic_0001>
module attributes {stable_mosaic.version = 11 : i64} {
  func.func @fused_forward_kernel(%arg0: i32, %arg1: memref<2x8xi32, #tpu.memory_space<vmem>>, %arg2: memref<16x1xi32, #tpu.memory_space<vmem>>, %arg3: memref<56x32xbf16, #tpu.memory_space<vmem>>, %arg4: memref<2x32x192xbf16, #tpu.memory_space<vmem>>, %arg5: memref<2x64x32xbf16, #tpu.memory_space<vmem>>, %arg6: memref<2x8x128xf32, #tpu.memory_space<vmem>>, %arg7: memref<24x128xf32, #tpu.memory_space<vmem>>, %arg8: memref<2x1xf32, #tpu.memory_space<vmem>>) attributes {dimension_semantics = [#tpu.dimension_semantics<parallel>], iteration_bounds = array<i64: 1>, scalar_prefetch = 0 : i64, scratch_operands = 0 : i64, tpu.core_type = #tpu.core_type<tc>, window_params = [{transform_indices = @transform_0, window_bounds = array<i64: 2, 8>}, {transform_indices = @transform_1, window_bounds = array<i64: 16, 1>}, {pipeline_mode = #tpu.pipeline_mode<synchronous>, transform_indices = @transform_2, window_bounds = array<i64: 56, 32>}, {pipeline_mode = #tpu.pipeline_mode<synchronous>, transform_indices = @transform_3, window_bounds = array<i64: 2, 32, 192>}, {pipeline_mode = #tpu.pipeline_mode<synchronous>, transform_indices = @transform_4, window_bounds = array<i64: 2, 64, 32>}, {pipeline_mode = #tpu.pipeline_mode<synchronous>, transform_indices = @transform_5, window_bounds = array<i64: 2, 8, 128>}, {pipeline_mode = #tpu.pipeline_mode<synchronous>, transform_indices = @transform_6, window_bounds = array<i64: 24, 128>}, {transform_indices = @transform_7, window_bounds = array<i64: 2, 1>}]} {
    %c0 = arith.constant 0 : index
    %c0_0 = arith.constant 0 : index
    %0 = vector.load %arg1[%c0, %c0_0] : memref<2x8xi32, #tpu.memory_space<vmem>>, vector<2x8xi32>
    %c0_1 = arith.constant 0 : index
    %c0_2 = arith.constant 0 : index
    %1 = vector.load %arg2[%c0_1, %c0_2] : memref<16x1xi32, #tpu.memory_space<vmem>>, vector<16x1xi32>
    %2 = tpu.iota {dimensions = array<i32: 1>} : vector<16x56xi32>
    %3 = vector.broadcast %1 : vector<16x1xi32> to vector<16x56xi32>
    %4 = arith.cmpi eq, %3, %2 : vector<16x56xi32>
    %5 = arith.extui %4 : vector<16x56xi1> to vector<16x56xi32>
    %6 = arith.sitofp %5 : vector<16x56xi32> to vector<16x56xf32>
    %7 = arith.truncf %6 : vector<16x56xf32> to vector<16x56xbf16>
    %c0_3 = arith.constant 0 : index
    %c0_4 = arith.constant 0 : index
    %8 = vector.load %arg3[%c0_3, %c0_4] : memref<56x32xbf16, #tpu.memory_space<vmem>>, vector<56x32xbf16>
    %cst = arith.constant dense<0.000000e+00> : vector<16x32xf32>
    %9 = tpu.matmul %7, %8, %cst {dimension_numbers = #tpu.dot_dimension_numbers<[1], [0], [0], [1], [0, 0, 1, 1], [], []>} : vector<16x56xbf16>, vector<56x32xbf16>, vector<16x32xf32> -> vector<16x32xf32>
    %c0_5 = arith.constant 0 : index
    %c0_6 = arith.constant 0 : index
    %10 = vector.load %arg7[%c0_5, %c0_6] : memref<24x128xf32, #tpu.memory_space<vmem>>, vector<8x32xf32>
    %11 = vector.shape_cast %9 : vector<16x32xf32> to vector<2x8x32xf32>
    %12 = vector.shape_cast %10 : vector<8x32xf32> to vector<1x8x32xf32>
    %13 = vector.broadcast %12 : vector<1x8x32xf32> to vector<2x8x32xf32>
    %14 = arith.addf %11, %13 : vector<2x8x32xf32>
    %15 = vector.shape_cast %14 : vector<2x8x32xf32> to vector<16x32xf32>
    %c0_i32 = arith.constant 0 : i32
    %16 = vector.broadcast %c0_i32 : i32 to vector<2x8xi32>
    %17 = arith.cmpi eq, %0, %16 : vector<2x8xi32>
    %cst_7 = arith.constant -1.000000e+09 : f32
    %cst_8 = arith.constant 0.000000e+00 : f32
    %18 = vector.broadcast %cst_7 : f32 to vector<2x8xf32>
    %19 = vector.broadcast %cst_8 : f32 to vector<2x8xf32>
    %20 = arith.select %17, %18, %19 : vector<2x8xi1>, vector<2x8xf32>
    %21 = vector.shape_cast %20 : vector<2x8xf32> to vector<2x1x8xf32>
    %22 = tpu.concatenate %21, %21, %21, %21 in 0 : vector<2x1x8xf32>, vector<2x1x8xf32>, vector<2x1x8xf32>, vector<2x1x8xf32> -> vector<8x1x8xf32>
    %c0_i32_9 = arith.constant 0 : i32
    %23 = vector.broadcast %c0_i32_9 : i32 to vector<2x8xi32>
    %24 = arith.cmpi ne, %0, %23 : vector<2x8xi32>
    %25 = arith.extui %24 : vector<2x8xi1> to vector<2x8xi32>
    %26 = arith.sitofp %25 : vector<2x8xi32> to vector<2x8xf32>
    %cst_10 = arith.constant dense<0.000000e+00> : vector<2xf32>
    %27 = vector.multi_reduction <add>, %26, %cst_10 [1] : vector<2x8xf32> to vector<2xf32>
    %28 = vector.shape_cast %27 : vector<2xf32> to vector<2x1xf32>
    %cst_11 = arith.constant 1.000000e+00 : f32
    %29 = vector.broadcast %cst_11 : f32 to vector<2x1xf32>
    %30 = arith.maximumf %28, %29 : vector<2x1xf32>
    %c0_12 = arith.constant 0 : index
    %c0_13 = arith.constant 0 : index
    %c0_14 = arith.constant 0 : index
    %31 = vector.load %arg4[%c0_12, %c0_13, %c0_14] : memref<2x32x192xbf16, #tpu.memory_space<vmem>>, vector<1x32x96xbf16>
    %32 = vector.shape_cast %31 : vector<1x32x96xbf16> to vector<32x96xbf16>
    %c0_15 = arith.constant 0 : index
    %c0_16 = arith.constant 0 : index
    %c96 = arith.constant 96 : index
    %33 = vector.load %arg4[%c0_15, %c0_16, %c96] : memref<2x32x192xbf16, #tpu.memory_space<vmem>>, vector<1x32x32xbf16>
    %34 = vector.shape_cast %33 : vector<1x32x32xbf16> to vector<32x32xbf16>
    %c0_17 = arith.constant 0 : index
    %c0_18 = arith.constant 0 : index
    %c128 = arith.constant 128 : index
    %35 = vector.load %arg4[%c0_17, %c0_18, %c128] : memref<2x32x192xbf16, #tpu.memory_space<vmem>>, vector<1x32x64xbf16>
    %36 = vector.shape_cast %35 : vector<1x32x64xbf16> to vector<32x64xbf16>
    %c0_19 = arith.constant 0 : index
    %c0_20 = arith.constant 0 : index
    %c0_21 = arith.constant 0 : index
    %37 = vector.load %arg5[%c0_19, %c0_20, %c0_21] : memref<2x64x32xbf16, #tpu.memory_space<vmem>>, vector<1x64x32xbf16>
    %38 = vector.shape_cast %37 : vector<1x64x32xbf16> to vector<64x32xbf16>
    %c0_22 = arith.constant 0 : index
    %c0_23 = arith.constant 0 : index
    %c0_24 = arith.constant 0 : index
    %39 = vector.load %arg6[%c0_22, %c0_23, %c0_24] : memref<2x8x128xf32, #tpu.memory_space<vmem>>, vector<1x1x96xf32>
    %40 = vector.shape_cast %39 : vector<1x1x96xf32> to vector<1x96xf32>
    %c0_25 = arith.constant 0 : index
    %c1 = arith.constant 1 : index
    %c0_26 = arith.constant 0 : index
    %41 = vector.load %arg6[%c0_25, %c1, %c0_26] : memref<2x8x128xf32, #tpu.memory_space<vmem>>, vector<1x1x32xf32>
    %42 = vector.shape_cast %41 : vector<1x1x32xf32> to vector<1x32xf32>
    %c0_27 = arith.constant 0 : index
    %c2 = arith.constant 2 : index
    %c0_28 = arith.constant 0 : index
    %43 = vector.load %arg6[%c0_27, %c2, %c0_28] : memref<2x8x128xf32, #tpu.memory_space<vmem>>, vector<1x1x64xf32>
    %44 = vector.shape_cast %43 : vector<1x1x64xf32> to vector<1x64xf32>
    %c0_29 = arith.constant 0 : index
    %c3 = arith.constant 3 : index
    %c0_30 = arith.constant 0 : index
    %45 = vector.load %arg6[%c0_29, %c3, %c0_30] : memref<2x8x128xf32, #tpu.memory_space<vmem>>, vector<1x1x32xf32>
    %46 = vector.shape_cast %45 : vector<1x1x32xf32> to vector<1x32xf32>
    %c0_31 = arith.constant 0 : index
    %c4 = arith.constant 4 : index
    %c0_32 = arith.constant 0 : index
    %47 = vector.load %arg6[%c0_31, %c4, %c0_32] : memref<2x8x128xf32, #tpu.memory_space<vmem>>, vector<1x1x32xf32>
    %48 = vector.shape_cast %47 : vector<1x1x32xf32> to vector<1x32xf32>
    %c0_33 = arith.constant 0 : index
    %c5 = arith.constant 5 : index
    %c0_34 = arith.constant 0 : index
    %49 = vector.load %arg6[%c0_33, %c5, %c0_34] : memref<2x8x128xf32, #tpu.memory_space<vmem>>, vector<1x1x32xf32>
    %50 = vector.shape_cast %49 : vector<1x1x32xf32> to vector<1x32xf32>
    %c0_35 = arith.constant 0 : index
    %c6 = arith.constant 6 : index
    %c0_36 = arith.constant 0 : index
    %51 = vector.load %arg6[%c0_35, %c6, %c0_36] : memref<2x8x128xf32, #tpu.memory_space<vmem>>, vector<1x1x32xf32>
    %52 = vector.shape_cast %51 : vector<1x1x32xf32> to vector<1x32xf32>
    %c0_37 = arith.constant 0 : index
    %c7 = arith.constant 7 : index
    %c0_38 = arith.constant 0 : index
    %53 = vector.load %arg6[%c0_37, %c7, %c0_38] : memref<2x8x128xf32, #tpu.memory_space<vmem>>, vector<1x1x32xf32>
    %54 = vector.shape_cast %53 : vector<1x1x32xf32> to vector<1x32xf32>
    %55 = arith.truncf %15 : vector<16x32xf32> to vector<16x32xbf16>
    %cst_39 = arith.constant dense<0.000000e+00> : vector<16x96xf32>
    %56 = tpu.matmul %55, %32, %cst_39 {dimension_numbers = #tpu.dot_dimension_numbers<[1], [0], [0], [1], [0, 0, 1, 1], [], []>} : vector<16x32xbf16>, vector<32x96xbf16>, vector<16x96xf32> -> vector<16x96xf32>
    %57 = vector.broadcast %40 : vector<1x96xf32> to vector<16x96xf32>
    %58 = arith.addf %56, %57 : vector<16x96xf32>
    %59 = vector.shape_cast %58 : vector<16x96xf32> to vector<2x8x96xf32>
    %60 = vector.extract_strided_slice %59 {offsets = [0, 0, 0], sizes = [2, 8, 24], strides = [1, 1, 1]} : vector<2x8x96xf32> to vector<2x8x24xf32>
    %61 = vector.extract_strided_slice %59 {offsets = [0, 0, 24], sizes = [2, 8, 24], strides = [1, 1, 1]} : vector<2x8x96xf32> to vector<2x8x24xf32>
    %62 = vector.extract_strided_slice %59 {offsets = [0, 0, 48], sizes = [2, 8, 24], strides = [1, 1, 1]} : vector<2x8x96xf32> to vector<2x8x24xf32>
    %63 = vector.extract_strided_slice %59 {offsets = [0, 0, 72], sizes = [2, 8, 24], strides = [1, 1, 1]} : vector<2x8x96xf32> to vector<2x8x24xf32>
    %64 = tpu.concatenate %60, %61, %62, %63 in 0 : vector<2x8x24xf32>, vector<2x8x24xf32>, vector<2x8x24xf32>, vector<2x8x24xf32> -> vector<8x8x24xf32>
    %65 = vector.extract_strided_slice %64 {offsets = [0, 0, 0], sizes = [8, 8, 8], strides = [1, 1, 1]} : vector<8x8x24xf32> to vector<8x8x8xf32>
    %66 = arith.truncf %65 : vector<8x8x8xf32> to vector<8x8x8xbf16>
    %67 = vector.extract_strided_slice %64 {offsets = [0, 0, 8], sizes = [8, 8, 8], strides = [1, 1, 1]} : vector<8x8x24xf32> to vector<8x8x8xf32>
    %68 = arith.truncf %67 : vector<8x8x8xf32> to vector<8x8x8xbf16>
    %69 = vector.extract_strided_slice %64 {offsets = [0, 0, 16], sizes = [8, 8, 8], strides = [1, 1, 1]} : vector<8x8x24xf32> to vector<8x8x8xf32>
    %70 = arith.truncf %69 : vector<8x8x8xf32> to vector<8x8x8xbf16>
    "tpu.trace_start"() <{level = 10 : i32, message = "bqd,bkd->bqk"}> : () -> ()
    %cst_40 = arith.constant dense<0.000000e+00> : vector<8x8x8xf32>
    %71 = tpu.matmul %66, %68, %cst_40 {dimension_numbers = #tpu.dot_dimension_numbers<[2], [2], [1], [1], [0, 0, 0, 1, 1, 1], [0], [0]>} : vector<8x8x8xbf16>, vector<8x8x8xbf16>, vector<8x8x8xf32> -> vector<8x8x8xf32>
    "tpu.trace_stop"() : () -> ()
    %cst_41 = arith.constant 0.353553385 : f32
    %72 = vector.broadcast %cst_41 : f32 to vector<8x8x8xf32>
    %73 = arith.mulf %71, %72 : vector<8x8x8xf32>
    %74 = vector.broadcast %22 : vector<8x1x8xf32> to vector<8x8x8xf32>
    %75 = arith.addf %73, %74 : vector<8x8x8xf32>
    %cst_42 = arith.constant dense<0xFF800000> : vector<8x8xf32>
    %76 = vector.multi_reduction <maximumf>, %75, %cst_42 [2] : vector<8x8x8xf32> to vector<8x8xf32>
    %77 = vector.shape_cast %76 : vector<8x8xf32> to vector<8x8x1xf32>
    %78 = vector.broadcast %77 : vector<8x8x1xf32> to vector<8x8x8xf32>
    %79 = arith.subf %75, %78 : vector<8x8x8xf32>
    %80 = math.exp %79 : vector<8x8x8xf32>
    %cst_43 = arith.constant dense<0.000000e+00> : vector<8x8xf32>
    %81 = vector.multi_reduction <add>, %80, %cst_43 [2] : vector<8x8x8xf32> to vector<8x8xf32>
    %82 = vector.shape_cast %81 : vector<8x8xf32> to vector<8x8x1xf32>
    %83 = tpu.reciprocal %82 {approx = true} : vector<8x8x1xf32> -> vector<8x8x1xf32>
    %84 = vector.broadcast %83 : vector<8x8x1xf32> to vector<8x8x8xf32>
    %85 = arith.mulf %80, %84 : vector<8x8x8xf32>
    %86 = arith.truncf %85 : vector<8x8x8xf32> to vector<8x8x8xbf16>
    "tpu.trace_start"() <{level = 10 : i32, message = "bqk,bkd->bqd"}> : () -> ()
    %cst_44 = arith.constant dense<0.000000e+00> : vector<8x8x8xf32>
    %87 = tpu.matmul %86, %70, %cst_44 {dimension_numbers = #tpu.dot_dimension_numbers<[2], [1], [1], [2], [0, 0, 0, 1, 1, 2], [0], [0]>} : vector<8x8x8xbf16>, vector<8x8x8xbf16>, vector<8x8x8xf32> -> vector<8x8x8xf32>
    "tpu.trace_stop"() : () -> ()
    %88 = vector.extract_strided_slice %87 {offsets = [0, 0, 0], sizes = [2, 8, 8], strides = [1, 1, 1]} : vector<8x8x8xf32> to vector<2x8x8xf32>
    %89 = vector.extract_strided_slice %87 {offsets = [2, 0, 0], sizes = [2, 8, 8], strides = [1, 1, 1]} : vector<8x8x8xf32> to vector<2x8x8xf32>
    %90 = vector.extract_strided_slice %87 {offsets = [4, 0, 0], sizes = [2, 8, 8], strides = [1, 1, 1]} : vector<8x8x8xf32> to vector<2x8x8xf32>
    %91 = vector.extract_strided_slice %87 {offsets = [6, 0, 0], sizes = [2, 8, 8], strides = [1, 1, 1]} : vector<8x8x8xf32> to vector<2x8x8xf32>
    %92 = tpu.concatenate %88, %89, %90, %91 in 2 : vector<2x8x8xf32>, vector<2x8x8xf32>, vector<2x8x8xf32>, vector<2x8x8xf32> -> vector<2x8x32xf32>
    %93 = vector.shape_cast %92 : vector<2x8x32xf32> to vector<16x32xf32>
    %94 = arith.truncf %93 : vector<16x32xf32> to vector<16x32xbf16>
    %cst_45 = arith.constant dense<0.000000e+00> : vector<16x32xf32>
    %95 = tpu.matmul %94, %34, %cst_45 {dimension_numbers = #tpu.dot_dimension_numbers<[1], [0], [0], [1], [0, 0, 1, 1], [], []>} : vector<16x32xbf16>, vector<32x32xbf16>, vector<16x32xf32> -> vector<16x32xf32>
    %96 = vector.broadcast %42 : vector<1x32xf32> to vector<16x32xf32>
    %97 = arith.addf %95, %96 : vector<16x32xf32>
    %98 = arith.addf %15, %97 : vector<16x32xf32>
    %cst_46 = arith.constant dense<0.000000e+00> : vector<16xf32>
    %99 = vector.multi_reduction <add>, %98, %cst_46 [1] : vector<16x32xf32> to vector<16xf32>
    %100 = vector.shape_cast %99 : vector<16xf32> to vector<16x1xf32>
    %cst_47 = arith.constant 3.200000e+01 : f32
    %101 = vector.broadcast %cst_47 : f32 to vector<16x1xf32>
    %102 = arith.divf %100, %101 : vector<16x1xf32>
    %103 = arith.mulf %98, %98 : vector<16x32xf32>
    %cst_48 = arith.constant dense<0.000000e+00> : vector<16xf32>
    %104 = vector.multi_reduction <add>, %103, %cst_48 [1] : vector<16x32xf32> to vector<16xf32>
    %105 = vector.shape_cast %104 : vector<16xf32> to vector<16x1xf32>
    %cst_49 = arith.constant 3.200000e+01 : f32
    %106 = vector.broadcast %cst_49 : f32 to vector<16x1xf32>
    %107 = arith.divf %105, %106 : vector<16x1xf32>
    %108 = arith.mulf %102, %102 : vector<16x1xf32>
    %109 = arith.subf %107, %108 : vector<16x1xf32>
    %110 = vector.broadcast %102 : vector<16x1xf32> to vector<16x32xf32>
    %111 = arith.subf %98, %110 : vector<16x32xf32>
    %cst_50 = arith.constant 9.99999974E-6 : f32
    %112 = vector.broadcast %cst_50 : f32 to vector<16x1xf32>
    %113 = arith.addf %109, %112 : vector<16x1xf32>
    %114 = math.rsqrt %113 : vector<16x1xf32>
    %115 = vector.broadcast %114 : vector<16x1xf32> to vector<16x32xf32>
    %116 = arith.mulf %111, %115 : vector<16x32xf32>
    %117 = vector.broadcast %48 : vector<1x32xf32> to vector<16x32xf32>
    %118 = arith.mulf %116, %117 : vector<16x32xf32>
    %119 = vector.broadcast %50 : vector<1x32xf32> to vector<16x32xf32>
    %120 = arith.addf %118, %119 : vector<16x32xf32>
    %121 = arith.truncf %120 : vector<16x32xf32> to vector<16x32xbf16>
    %cst_51 = arith.constant dense<0.000000e+00> : vector<16x64xf32>
    %122 = tpu.matmul %121, %36, %cst_51 {dimension_numbers = #tpu.dot_dimension_numbers<[1], [0], [0], [1], [0, 0, 1, 1], [], []>} : vector<16x32xbf16>, vector<32x64xbf16>, vector<16x64xf32> -> vector<16x64xf32>
    %123 = vector.broadcast %44 : vector<1x64xf32> to vector<16x64xf32>
    %124 = arith.addf %122, %123 : vector<16x64xf32>
    %cst_52 = arith.constant 0.000000e+00 : f32
    %125 = vector.broadcast %cst_52 : f32 to vector<16x64xf32>
    %126 = arith.maximumf %124, %125 : vector<16x64xf32>
    %127 = arith.truncf %126 : vector<16x64xf32> to vector<16x64xbf16>
    %cst_53 = arith.constant dense<0.000000e+00> : vector<16x32xf32>
    %128 = tpu.matmul %127, %38, %cst_53 {dimension_numbers = #tpu.dot_dimension_numbers<[1], [0], [0], [1], [0, 0, 1, 1], [], []>} : vector<16x64xbf16>, vector<64x32xbf16>, vector<16x32xf32> -> vector<16x32xf32>
    %129 = vector.broadcast %46 : vector<1x32xf32> to vector<16x32xf32>
    %130 = arith.addf %128, %129 : vector<16x32xf32>
    %131 = arith.addf %120, %130 : vector<16x32xf32>
    %cst_54 = arith.constant dense<0.000000e+00> : vector<16xf32>
    %132 = vector.multi_reduction <add>, %131, %cst_54 [1] : vector<16x32xf32> to vector<16xf32>
    %133 = vector.shape_cast %132 : vector<16xf32> to vector<16x1xf32>
    %cst_55 = arith.constant 3.200000e+01 : f32
    %134 = vector.broadcast %cst_55 : f32 to vector<16x1xf32>
    %135 = arith.divf %133, %134 : vector<16x1xf32>
    %136 = arith.mulf %131, %131 : vector<16x32xf32>
    %cst_56 = arith.constant dense<0.000000e+00> : vector<16xf32>
    %137 = vector.multi_reduction <add>, %136, %cst_56 [1] : vector<16x32xf32> to vector<16xf32>
    %138 = vector.shape_cast %137 : vector<16xf32> to vector<16x1xf32>
    %cst_57 = arith.constant 3.200000e+01 : f32
    %139 = vector.broadcast %cst_57 : f32 to vector<16x1xf32>
    %140 = arith.divf %138, %139 : vector<16x1xf32>
    %141 = arith.mulf %135, %135 : vector<16x1xf32>
    %142 = arith.subf %140, %141 : vector<16x1xf32>
    %143 = vector.broadcast %135 : vector<16x1xf32> to vector<16x32xf32>
    %144 = arith.subf %131, %143 : vector<16x32xf32>
    %cst_58 = arith.constant 9.99999974E-6 : f32
    %145 = vector.broadcast %cst_58 : f32 to vector<16x1xf32>
    %146 = arith.addf %142, %145 : vector<16x1xf32>
    %147 = math.rsqrt %146 : vector<16x1xf32>
    %148 = vector.broadcast %147 : vector<16x1xf32> to vector<16x32xf32>
    %149 = arith.mulf %144, %148 : vector<16x32xf32>
    %150 = vector.broadcast %52 : vector<1x32xf32> to vector<16x32xf32>
    %151 = arith.mulf %149, %150 : vector<16x32xf32>
    %152 = vector.broadcast %54 : vector<1x32xf32> to vector<16x32xf32>
    %153 = arith.addf %151, %152 : vector<16x32xf32>
    %c1_59 = arith.constant 1 : index
    %c0_60 = arith.constant 0 : index
    %c0_61 = arith.constant 0 : index
    %154 = vector.load %arg4[%c1_59, %c0_60, %c0_61] : memref<2x32x192xbf16, #tpu.memory_space<vmem>>, vector<1x32x96xbf16>
    %155 = vector.shape_cast %154 : vector<1x32x96xbf16> to vector<32x96xbf16>
    %c1_62 = arith.constant 1 : index
    %c0_63 = arith.constant 0 : index
    %c96_64 = arith.constant 96 : index
    %156 = vector.load %arg4[%c1_62, %c0_63, %c96_64] : memref<2x32x192xbf16, #tpu.memory_space<vmem>>, vector<1x32x32xbf16>
    %157 = vector.shape_cast %156 : vector<1x32x32xbf16> to vector<32x32xbf16>
    %c1_65 = arith.constant 1 : index
    %c0_66 = arith.constant 0 : index
    %c128_67 = arith.constant 128 : index
    %158 = vector.load %arg4[%c1_65, %c0_66, %c128_67] : memref<2x32x192xbf16, #tpu.memory_space<vmem>>, vector<1x32x64xbf16>
    %159 = vector.shape_cast %158 : vector<1x32x64xbf16> to vector<32x64xbf16>
    %c1_68 = arith.constant 1 : index
    %c0_69 = arith.constant 0 : index
    %c0_70 = arith.constant 0 : index
    %160 = vector.load %arg5[%c1_68, %c0_69, %c0_70] : memref<2x64x32xbf16, #tpu.memory_space<vmem>>, vector<1x64x32xbf16>
    %161 = vector.shape_cast %160 : vector<1x64x32xbf16> to vector<64x32xbf16>
    %c1_71 = arith.constant 1 : index
    %c0_72 = arith.constant 0 : index
    %c0_73 = arith.constant 0 : index
    %162 = vector.load %arg6[%c1_71, %c0_72, %c0_73] : memref<2x8x128xf32, #tpu.memory_space<vmem>>, vector<1x1x96xf32>
    %163 = vector.shape_cast %162 : vector<1x1x96xf32> to vector<1x96xf32>
    %c1_74 = arith.constant 1 : index
    %c1_75 = arith.constant 1 : index
    %c0_76 = arith.constant 0 : index
    %164 = vector.load %arg6[%c1_74, %c1_75, %c0_76] : memref<2x8x128xf32, #tpu.memory_space<vmem>>, vector<1x1x32xf32>
    %165 = vector.shape_cast %164 : vector<1x1x32xf32> to vector<1x32xf32>
    %c1_77 = arith.constant 1 : index
    %c2_78 = arith.constant 2 : index
    %c0_79 = arith.constant 0 : index
    %166 = vector.load %arg6[%c1_77, %c2_78, %c0_79] : memref<2x8x128xf32, #tpu.memory_space<vmem>>, vector<1x1x64xf32>
    %167 = vector.shape_cast %166 : vector<1x1x64xf32> to vector<1x64xf32>
    %c1_80 = arith.constant 1 : index
    %c3_81 = arith.constant 3 : index
    %c0_82 = arith.constant 0 : index
    %168 = vector.load %arg6[%c1_80, %c3_81, %c0_82] : memref<2x8x128xf32, #tpu.memory_space<vmem>>, vector<1x1x32xf32>
    %169 = vector.shape_cast %168 : vector<1x1x32xf32> to vector<1x32xf32>
    %c1_83 = arith.constant 1 : index
    %c4_84 = arith.constant 4 : index
    %c0_85 = arith.constant 0 : index
    %170 = vector.load %arg6[%c1_83, %c4_84, %c0_85] : memref<2x8x128xf32, #tpu.memory_space<vmem>>, vector<1x1x32xf32>
    %171 = vector.shape_cast %170 : vector<1x1x32xf32> to vector<1x32xf32>
    %c1_86 = arith.constant 1 : index
    %c5_87 = arith.constant 5 : index
    %c0_88 = arith.constant 0 : index
    %172 = vector.load %arg6[%c1_86, %c5_87, %c0_88] : memref<2x8x128xf32, #tpu.memory_space<vmem>>, vector<1x1x32xf32>
    %173 = vector.shape_cast %172 : vector<1x1x32xf32> to vector<1x32xf32>
    %c1_89 = arith.constant 1 : index
    %c6_90 = arith.constant 6 : index
    %c0_91 = arith.constant 0 : index
    %174 = vector.load %arg6[%c1_89, %c6_90, %c0_91] : memref<2x8x128xf32, #tpu.memory_space<vmem>>, vector<1x1x32xf32>
    %175 = vector.shape_cast %174 : vector<1x1x32xf32> to vector<1x32xf32>
    %c1_92 = arith.constant 1 : index
    %c7_93 = arith.constant 7 : index
    %c0_94 = arith.constant 0 : index
    %176 = vector.load %arg6[%c1_92, %c7_93, %c0_94] : memref<2x8x128xf32, #tpu.memory_space<vmem>>, vector<1x1x32xf32>
    %177 = vector.shape_cast %176 : vector<1x1x32xf32> to vector<1x32xf32>
    %178 = arith.truncf %153 : vector<16x32xf32> to vector<16x32xbf16>
    %cst_95 = arith.constant dense<0.000000e+00> : vector<16x96xf32>
    %179 = tpu.matmul %178, %155, %cst_95 {dimension_numbers = #tpu.dot_dimension_numbers<[1], [0], [0], [1], [0, 0, 1, 1], [], []>} : vector<16x32xbf16>, vector<32x96xbf16>, vector<16x96xf32> -> vector<16x96xf32>
    %180 = vector.broadcast %163 : vector<1x96xf32> to vector<16x96xf32>
    %181 = arith.addf %179, %180 : vector<16x96xf32>
    %182 = vector.shape_cast %181 : vector<16x96xf32> to vector<2x8x96xf32>
    %183 = vector.extract_strided_slice %182 {offsets = [0, 0, 0], sizes = [2, 8, 24], strides = [1, 1, 1]} : vector<2x8x96xf32> to vector<2x8x24xf32>
    %184 = vector.extract_strided_slice %182 {offsets = [0, 0, 24], sizes = [2, 8, 24], strides = [1, 1, 1]} : vector<2x8x96xf32> to vector<2x8x24xf32>
    %185 = vector.extract_strided_slice %182 {offsets = [0, 0, 48], sizes = [2, 8, 24], strides = [1, 1, 1]} : vector<2x8x96xf32> to vector<2x8x24xf32>
    %186 = vector.extract_strided_slice %182 {offsets = [0, 0, 72], sizes = [2, 8, 24], strides = [1, 1, 1]} : vector<2x8x96xf32> to vector<2x8x24xf32>
    %187 = tpu.concatenate %183, %184, %185, %186 in 0 : vector<2x8x24xf32>, vector<2x8x24xf32>, vector<2x8x24xf32>, vector<2x8x24xf32> -> vector<8x8x24xf32>
    %188 = vector.extract_strided_slice %187 {offsets = [0, 0, 0], sizes = [8, 8, 8], strides = [1, 1, 1]} : vector<8x8x24xf32> to vector<8x8x8xf32>
    %189 = arith.truncf %188 : vector<8x8x8xf32> to vector<8x8x8xbf16>
    %190 = vector.extract_strided_slice %187 {offsets = [0, 0, 8], sizes = [8, 8, 8], strides = [1, 1, 1]} : vector<8x8x24xf32> to vector<8x8x8xf32>
    %191 = arith.truncf %190 : vector<8x8x8xf32> to vector<8x8x8xbf16>
    %192 = vector.extract_strided_slice %187 {offsets = [0, 0, 16], sizes = [8, 8, 8], strides = [1, 1, 1]} : vector<8x8x24xf32> to vector<8x8x8xf32>
    %193 = arith.truncf %192 : vector<8x8x8xf32> to vector<8x8x8xbf16>
    "tpu.trace_start"() <{level = 10 : i32, message = "bqd,bkd->bqk"}> : () -> ()
    %cst_96 = arith.constant dense<0.000000e+00> : vector<8x8x8xf32>
    %194 = tpu.matmul %189, %191, %cst_96 {dimension_numbers = #tpu.dot_dimension_numbers<[2], [2], [1], [1], [0, 0, 0, 1, 1, 1], [0], [0]>} : vector<8x8x8xbf16>, vector<8x8x8xbf16>, vector<8x8x8xf32> -> vector<8x8x8xf32>
    "tpu.trace_stop"() : () -> ()
    %cst_97 = arith.constant 0.353553385 : f32
    %195 = vector.broadcast %cst_97 : f32 to vector<8x8x8xf32>
    %196 = arith.mulf %194, %195 : vector<8x8x8xf32>
    %197 = vector.broadcast %22 : vector<8x1x8xf32> to vector<8x8x8xf32>
    %198 = arith.addf %196, %197 : vector<8x8x8xf32>
    %cst_98 = arith.constant dense<0xFF800000> : vector<8x8xf32>
    %199 = vector.multi_reduction <maximumf>, %198, %cst_98 [2] : vector<8x8x8xf32> to vector<8x8xf32>
    %200 = vector.shape_cast %199 : vector<8x8xf32> to vector<8x8x1xf32>
    %201 = vector.broadcast %200 : vector<8x8x1xf32> to vector<8x8x8xf32>
    %202 = arith.subf %198, %201 : vector<8x8x8xf32>
    %203 = math.exp %202 : vector<8x8x8xf32>
    %cst_99 = arith.constant dense<0.000000e+00> : vector<8x8xf32>
    %204 = vector.multi_reduction <add>, %203, %cst_99 [2] : vector<8x8x8xf32> to vector<8x8xf32>
    %205 = vector.shape_cast %204 : vector<8x8xf32> to vector<8x8x1xf32>
    %206 = tpu.reciprocal %205 {approx = true} : vector<8x8x1xf32> -> vector<8x8x1xf32>
    %207 = vector.broadcast %206 : vector<8x8x1xf32> to vector<8x8x8xf32>
    %208 = arith.mulf %203, %207 : vector<8x8x8xf32>
    %209 = arith.truncf %208 : vector<8x8x8xf32> to vector<8x8x8xbf16>
    "tpu.trace_start"() <{level = 10 : i32, message = "bqk,bkd->bqd"}> : () -> ()
    %cst_100 = arith.constant dense<0.000000e+00> : vector<8x8x8xf32>
    %210 = tpu.matmul %209, %193, %cst_100 {dimension_numbers = #tpu.dot_dimension_numbers<[2], [1], [1], [2], [0, 0, 0, 1, 1, 2], [0], [0]>} : vector<8x8x8xbf16>, vector<8x8x8xbf16>, vector<8x8x8xf32> -> vector<8x8x8xf32>
    "tpu.trace_stop"() : () -> ()
    %211 = vector.extract_strided_slice %210 {offsets = [0, 0, 0], sizes = [2, 8, 8], strides = [1, 1, 1]} : vector<8x8x8xf32> to vector<2x8x8xf32>
    %212 = vector.extract_strided_slice %210 {offsets = [2, 0, 0], sizes = [2, 8, 8], strides = [1, 1, 1]} : vector<8x8x8xf32> to vector<2x8x8xf32>
    %213 = vector.extract_strided_slice %210 {offsets = [4, 0, 0], sizes = [2, 8, 8], strides = [1, 1, 1]} : vector<8x8x8xf32> to vector<2x8x8xf32>
    %214 = vector.extract_strided_slice %210 {offsets = [6, 0, 0], sizes = [2, 8, 8], strides = [1, 1, 1]} : vector<8x8x8xf32> to vector<2x8x8xf32>
    %215 = tpu.concatenate %211, %212, %213, %214 in 2 : vector<2x8x8xf32>, vector<2x8x8xf32>, vector<2x8x8xf32>, vector<2x8x8xf32> -> vector<2x8x32xf32>
    %216 = vector.shape_cast %215 : vector<2x8x32xf32> to vector<16x32xf32>
    %217 = arith.truncf %216 : vector<16x32xf32> to vector<16x32xbf16>
    %cst_101 = arith.constant dense<0.000000e+00> : vector<16x32xf32>
    %218 = tpu.matmul %217, %157, %cst_101 {dimension_numbers = #tpu.dot_dimension_numbers<[1], [0], [0], [1], [0, 0, 1, 1], [], []>} : vector<16x32xbf16>, vector<32x32xbf16>, vector<16x32xf32> -> vector<16x32xf32>
    %219 = vector.broadcast %165 : vector<1x32xf32> to vector<16x32xf32>
    %220 = arith.addf %218, %219 : vector<16x32xf32>
    %221 = arith.addf %153, %220 : vector<16x32xf32>
    %cst_102 = arith.constant dense<0.000000e+00> : vector<16xf32>
    %222 = vector.multi_reduction <add>, %221, %cst_102 [1] : vector<16x32xf32> to vector<16xf32>
    %223 = vector.shape_cast %222 : vector<16xf32> to vector<16x1xf32>
    %cst_103 = arith.constant 3.200000e+01 : f32
    %224 = vector.broadcast %cst_103 : f32 to vector<16x1xf32>
    %225 = arith.divf %223, %224 : vector<16x1xf32>
    %226 = arith.mulf %221, %221 : vector<16x32xf32>
    %cst_104 = arith.constant dense<0.000000e+00> : vector<16xf32>
    %227 = vector.multi_reduction <add>, %226, %cst_104 [1] : vector<16x32xf32> to vector<16xf32>
    %228 = vector.shape_cast %227 : vector<16xf32> to vector<16x1xf32>
    %cst_105 = arith.constant 3.200000e+01 : f32
    %229 = vector.broadcast %cst_105 : f32 to vector<16x1xf32>
    %230 = arith.divf %228, %229 : vector<16x1xf32>
    %231 = arith.mulf %225, %225 : vector<16x1xf32>
    %232 = arith.subf %230, %231 : vector<16x1xf32>
    %233 = vector.broadcast %225 : vector<16x1xf32> to vector<16x32xf32>
    %234 = arith.subf %221, %233 : vector<16x32xf32>
    %cst_106 = arith.constant 9.99999974E-6 : f32
    %235 = vector.broadcast %cst_106 : f32 to vector<16x1xf32>
    %236 = arith.addf %232, %235 : vector<16x1xf32>
    %237 = math.rsqrt %236 : vector<16x1xf32>
    %238 = vector.broadcast %237 : vector<16x1xf32> to vector<16x32xf32>
    %239 = arith.mulf %234, %238 : vector<16x32xf32>
    %240 = vector.broadcast %171 : vector<1x32xf32> to vector<16x32xf32>
    %241 = arith.mulf %239, %240 : vector<16x32xf32>
    %242 = vector.broadcast %173 : vector<1x32xf32> to vector<16x32xf32>
    %243 = arith.addf %241, %242 : vector<16x32xf32>
    %244 = arith.truncf %243 : vector<16x32xf32> to vector<16x32xbf16>
    %cst_107 = arith.constant dense<0.000000e+00> : vector<16x64xf32>
    %245 = tpu.matmul %244, %159, %cst_107 {dimension_numbers = #tpu.dot_dimension_numbers<[1], [0], [0], [1], [0, 0, 1, 1], [], []>} : vector<16x32xbf16>, vector<32x64xbf16>, vector<16x64xf32> -> vector<16x64xf32>
    %246 = vector.broadcast %167 : vector<1x64xf32> to vector<16x64xf32>
    %247 = arith.addf %245, %246 : vector<16x64xf32>
    %cst_108 = arith.constant 0.000000e+00 : f32
    %248 = vector.broadcast %cst_108 : f32 to vector<16x64xf32>
    %249 = arith.maximumf %247, %248 : vector<16x64xf32>
    %250 = arith.truncf %249 : vector<16x64xf32> to vector<16x64xbf16>
    %cst_109 = arith.constant dense<0.000000e+00> : vector<16x32xf32>
    %251 = tpu.matmul %250, %161, %cst_109 {dimension_numbers = #tpu.dot_dimension_numbers<[1], [0], [0], [1], [0, 0, 1, 1], [], []>} : vector<16x64xbf16>, vector<64x32xbf16>, vector<16x32xf32> -> vector<16x32xf32>
    %252 = vector.broadcast %169 : vector<1x32xf32> to vector<16x32xf32>
    %253 = arith.addf %251, %252 : vector<16x32xf32>
    %254 = arith.addf %243, %253 : vector<16x32xf32>
    %cst_110 = arith.constant dense<0.000000e+00> : vector<16xf32>
    %255 = vector.multi_reduction <add>, %254, %cst_110 [1] : vector<16x32xf32> to vector<16xf32>
    %256 = vector.shape_cast %255 : vector<16xf32> to vector<16x1xf32>
    %cst_111 = arith.constant 3.200000e+01 : f32
    %257 = vector.broadcast %cst_111 : f32 to vector<16x1xf32>
    %258 = arith.divf %256, %257 : vector<16x1xf32>
    %259 = arith.mulf %254, %254 : vector<16x32xf32>
    %cst_112 = arith.constant dense<0.000000e+00> : vector<16xf32>
    %260 = vector.multi_reduction <add>, %259, %cst_112 [1] : vector<16x32xf32> to vector<16xf32>
    %261 = vector.shape_cast %260 : vector<16xf32> to vector<16x1xf32>
    %cst_113 = arith.constant 3.200000e+01 : f32
    %262 = vector.broadcast %cst_113 : f32 to vector<16x1xf32>
    %263 = arith.divf %261, %262 : vector<16x1xf32>
    %264 = arith.mulf %258, %258 : vector<16x1xf32>
    %265 = arith.subf %263, %264 : vector<16x1xf32>
    %266 = vector.broadcast %258 : vector<16x1xf32> to vector<16x32xf32>
    %267 = arith.subf %254, %266 : vector<16x32xf32>
    %cst_114 = arith.constant 9.99999974E-6 : f32
    %268 = vector.broadcast %cst_114 : f32 to vector<16x1xf32>
    %269 = arith.addf %265, %268 : vector<16x1xf32>
    %270 = math.rsqrt %269 : vector<16x1xf32>
    %271 = vector.broadcast %270 : vector<16x1xf32> to vector<16x32xf32>
    %272 = arith.mulf %267, %271 : vector<16x32xf32>
    %273 = vector.broadcast %175 : vector<1x32xf32> to vector<16x32xf32>
    %274 = arith.mulf %272, %273 : vector<16x32xf32>
    %275 = vector.broadcast %177 : vector<1x32xf32> to vector<16x32xf32>
    %276 = arith.addf %274, %275 : vector<16x32xf32>
    %277 = vector.shape_cast %276 : vector<16x32xf32> to vector<2x8x32xf32>
    %cst_115 = arith.constant dense<0.000000e+00> : vector<2x32xf32>
    %278 = vector.multi_reduction <add>, %277, %cst_115 [1] : vector<2x8x32xf32> to vector<2x32xf32>
    %279 = vector.broadcast %30 : vector<2x1xf32> to vector<2x32xf32>
    %280 = arith.divf %278, %279 : vector<2x32xf32>
    %c16 = arith.constant 16 : index
    %c0_116 = arith.constant 0 : index
    %281 = vector.load %arg7[%c16, %c0_116] : memref<24x128xf32, #tpu.memory_space<vmem>>, vector<1x32xf32>
    %c17 = arith.constant 17 : index
    %c0_117 = arith.constant 0 : index
    %282 = vector.load %arg7[%c17, %c0_117] : memref<24x128xf32, #tpu.memory_space<vmem>>, vector<1x1xf32>
    %283 = vector.broadcast %281 : vector<1x32xf32> to vector<2x32xf32>
    %284 = arith.mulf %280, %283 : vector<2x32xf32>
    %cst_118 = arith.constant dense<0.000000e+00> : vector<2xf32>
    %285 = vector.multi_reduction <add>, %284, %cst_118 [1] : vector<2x32xf32> to vector<2xf32>
    %286 = vector.shape_cast %285 : vector<2xf32> to vector<2x1xf32>
    %287 = vector.broadcast %282 : vector<1x1xf32> to vector<2x1xf32>
    %288 = arith.addf %286, %287 : vector<2x1xf32>
    %c0_119 = arith.constant 0 : index
    %c0_120 = arith.constant 0 : index
    %289 = vector.load %arg8[%c0_119, %c0_120] : memref<2x1xf32, #tpu.memory_space<vmem>>, vector<2x1xf32>
    tpu.vector_store %arg8[%c0_119, %c0_120], %288 {strides = array<i32>} : memref<2x1xf32, #tpu.memory_space<vmem>>, vector<2x1xf32>,
    return
  }
  func.func @transform_0(%arg0: i32) -> (i32, i32) {
    %c0_i32 = arith.constant 0 : i32
    %c0_i32_0 = arith.constant 0 : i32
    return %arg0, %c0_i32 : i32, i32
  }
  func.func @transform_1(%arg0: i32) -> (i32, i32) {
    %c0_i32 = arith.constant 0 : i32
    %c0_i32_0 = arith.constant 0 : i32
    return %arg0, %c0_i32 : i32, i32
  }
  func.func @transform_2(%arg0: i32) -> (i32, i32) {
    %c0_i32 = arith.constant 0 : i32
    %c0_i32_0 = arith.constant 0 : i32
    %c0_i32_1 = arith.constant 0 : i32
    return %c0_i32, %c0_i32_0 : i32, i32
  }
  func.func @transform_3(%arg0: i32) -> (i32, i32, i32) {
    %c0_i32 = arith.constant 0 : i32
    %c0_i32_0 = arith.constant 0 : i32
    %c0_i32_1 = arith.constant 0 : i32
    %c0_i32_2 = arith.constant 0 : i32
    return %c0_i32, %c0_i32_0, %c0_i32_1 : i32, i32, i32
  }
  func.func @transform_4(%arg0: i32) -> (i32, i32, i32) {
    %c0_i32 = arith.constant 0 : i32
    %c0_i32_0 = arith.constant 0 : i32
    %c0_i32_1 = arith.constant 0 : i32
    %c0_i32_2 = arith.constant 0 : i32
    return %c0_i32, %c0_i32_0, %c0_i32_1 : i32, i32, i32
  }
  func.func @transform_5(%arg0: i32) -> (i32, i32, i32) {
    %c0_i32 = arith.constant 0 : i32
    %c0_i32_0 = arith.constant 0 : i32
    %c0_i32_1 = arith.constant 0 : i32
    %c0_i32_2 = arith.constant 0 : i32
    return %c0_i32, %c0_i32_0, %c0_i32_1 : i32, i32, i32
  }
  func.func @transform_6(%arg0: i32) -> (i32, i32) {
    %c0_i32 = arith.constant 0 : i32
    %c0_i32_0 = arith.constant 0 : i32
    %c0_i32_1 = arith.constant 0 : i32
    return %c0_i32, %c0_i32_0 : i32, i32
  }
  func.func @transform_7(%arg0: i32) -> (i32, i32) {
    %c0_i32 = arith.constant 0 : i32
    %c0_i32_0 = arith.constant 0 : i32
    return %arg0, %c0_i32 : i32, i32
  }
}

</mosaic_0001>

<bundles_post_ra>
// kernel: sentiment_transformer_forward.1
= control target key start
LH: loop header
LB: loop body
LE: loop exit
PB: predicated region body
PF: predicated region fallthrough
CT: control target
= control target key end

     0   :  { %v3506_v0 = vmov 0   ;;  %v3507_v2 = vmov 0.0   ;;  %vm3508_vm0 = vmmov 0   ;;  %vm77_vm1 = vcmask 1043456   ;;  %s3509_s19 = smov 56   ;;  %s3510_s20 = smov 104   ;;  %s4194_s1 = inlined_call_operand.vmem [shape: s32[16,1], index: 1, kind: input, shape index: {}]   ;;  %s4195_s2 = inlined_call_operand.vmem [shape: bf16[56,32], index: 2, kind: input, shape index: {}]   ;;  %s4196_s3 = inlined_call_operand.vmem [shape: bf16[2,32,192], index: 3, kind: input, shape index: {}]   ;;  %s4197_s6 = inlined_call_operand.vmem [shape: f32[24,128], index: 6, kind: input, shape index: {}]   ;;  %s4198_s5 = inlined_call_operand.vmem [shape: f32[2,8,128], index: 5, kind: input, shape index: {}]   ;;  %s4199_s0 = inlined_call_operand.vmem [shape: s32[2,8], index: 0, kind: input, shape index: {}]   ;;  %s4200_s4 = inlined_call_operand.vmem [shape: bf16[2,64,32], index: 4, kind: input, shape index: {}]   ;;  %s4201_s7 = inlined_call_operand.vmem [shape: f32[2,1], index: 7, kind: output, shape index: {}]  }
   0x1   :  { %3340 = vset.pattern.permute.xlu0 %v3506_v0  ;;  %v28_v1 = vld [vmem:[%s4194_s1] sm:$0xff]  ;;  %3051 = vmatprep.subr.bf16.mxu0 %v3507_v2  ;;  %v29_v4 = vld [vmem:[%s4194_s1 + $0x8] sm:$0xff]  ;;  %v3403_v6 = vld [vmem:[%s4195_s2 + $0x10] sm:$0xff]   ;;  %v30_v9 = vlaneseq  ;;  %vm73_vm4 = vcmask 457728   ;;  %vm199_vm5 = vcmask 261120   ;;  %s3511_s21 = smov 80  }
   0x2   :  { %33 = vperm.xlu0 %3340, %v28_v1   ;;  %v3401_v3 = vld [vmem:[%s4195_s2] sm:$0xff]   ;;  %3063 = vmatprep.subr.bf16.mxu1 %v3507_v2  ;;  %v3402_v5 = vld [vmem:[%s4195_s2 + $0x8] sm:$0xff]   ;;  %v3404_v7 = vld [vmem:[%s4195_s2 + $0x18] ss:$0 sps:$4 sm:$0xff]   ;;  %s3512_s22 = smov 120   ;;  %vm275_vm6 = vcmask 64512  }
   0x3   :  { %3052 = vmatpush3.bf16.msra.mxu0 %v3401_v3  ;;  %3059 = vmatprep.mubr.msk.bf16.mxu0 %vm3508_vm0, %v3507_v2  ;;  %v79_v8 = vsel %vm77_vm1, %v3404_v7, 0  ;;  %v31_v10 = vand.u32 127, %v30_v9  ;;  %v3596_v16 = vld [vmem:[%s4196_s3] ss:$8 sps:$4 sm:$0xff]   ;;  %v3603_v17 = vld [vmem:[%s4196_s3 + $0x10] ss:$8 sps:$4 sm:$0xff]  }
   0x4   :  { %3053 = vmatprep.subr.bf16.mxu0 %v3507_v2  ;;  %3067 = vmatprep.mubr.msk.bf16.mxu1 %vm3508_vm0, %v3507_v2  ;;  %v122_v19 = vld [vmem:[%s4197_s6] sm:$0xff]  ;;  %s3513_s23 = smov 112   ;;  %s3515_s26 = smov 32   ;;  %vm1197_vm8 = vcmask 130048   ;;  %vm1200_vm9 = vcmask 195584   ;;  %vm1395_vm10 = vcmask 523264  }
   0x5   :  { %3064 = vmatpush3.bf16.msra.mxu1 %v3596_v16  ;;  %v2856_v26 = vld [vmem:[%s4198_s5] ss:$0 sm:$0xff]  ;;  %s3516_s27 = smov 8   ;;  %s3517_s28 = smov 16   ;;  %vm153_vm12 = vcmask 58368   ;;  %vm2830_vm13 = vcmask 1041409  }
   0x6   :  { %36 = vperm.xlu0 %3340, %v29_v4   ;;  %3065 = vmatprep.subr.bf16.mxu1 %v3507_v2  ;;  %s3518_s29 = smov 24   ;;  %vm2833_vm14 = vcmask 254976   ;;  %vm2842_vm15 = vcmask 1024  }
   0x7   :  { %3054 = vmatpush3.bf16.msra.mxu0 %v3402_v5 }
   0x8   :  { %3055 = vmatprep.subr.bf16.mxu0 %v3507_v2 }
   0x9   :  { %3066 = vmatpush3.bf16.msra.mxu1 %v3603_v17 }
   0xa   :  { %3071 = vmatprep.subr.bf16.mxu1 %v3507_v2 }
   0xb   :  { %3056 = vmatpush3.bf16.msra.mxu0 %v3403_v6 }
   0xc   :  { %3057 = vmatprep.subr.bf16.mxu0 %v3507_v2 }
   0xf   :  { %3058 = vmatpush3.bf16.msra.mxu0 %v79_v8  ;;  %v3514_v8 = vmov 1966171168  }
  0x10   :  { %3089 = vmatprep.subr.bf16.mxu0 %v3507_v2 }
  0x81   :  { %v34_v11 = vpop.permute.xlu0 %33 }
  0x82   :  { %vm38_vm2 = vcmp.eq.s32.totalorder %v34_v11, %v31_v10  ;;  %v27_v11 = vld [vmem:[%s4199_s0] sm:$0x3] }
  0x83   :  { %v2848_v13 = vsel %vm38_vm2, 1.0, %v3507_v2  ;;  %vm125_vm7 = vcmp.eq.s32.totalorder %v27_v11, 0 }
  0x85   :  { %v37_v12 = vpop.permute.xlu0 %36 }
  0x86   :  { %vm39_vm3 = vcmp.eq.s32.totalorder %v37_v12, %v31_v10  ;;  %v129_v10 = vunpack.c.l.s4 %v3514_v8 }
  0x87   :  { %v2849_v14 = vsel %vm39_vm3, 1.0, %v3507_v2 }
  0x88   :  { %v44_v15 = vpack.c.bf16 %v2849_v14, %v2848_v13  ;;  %v130_v12 = vunpack.c.0.s8 %v129_v10  ;;  %v132_v13 = vshrl.u32 %v30_v9, 7 }
  0x8a   :  { %3060 = vmatmul.mubr.msk.bf16.vlgmr.msra.gmra.mrb[0].mxu0 %vm73_vm4, %v44_v15  ;;  %v133_v14 = vsub.s32 %v130_v12, %v132_v13  ;;  %v126_v15 = vsel %vm125_vm7, -1e+09, %v3507_v2 }
  0x8b   :  { %3091 = vmatprep.mubr.msk.bf16.mxu0 %vm3508_vm0, %v3507_v2 }
 0x15d   :  { %v115_v18 = vpop.f32.mrb[0].mxu0 }
 0x15e   :  { %v3061_v20 = vpop.f32.mrb[1].mxu0  ;;  %v3610_v22 = vadd.f32 %v122_v19, %v115_v18  ;;  %v134_v18 = vrot.slane %v126_v15, %v133_v14 }
 0x15f   :  { %v118_v21 = vpop.f32.mrb[2].mxu0 }
 0x160   :  { %v3612_v23 = vadd.f32 %v122_v19, %v118_v21  ;;  %v3062_v24 = vpop.f32.mrb[3].mxu0  ;;  %v675_v19 = vsub.s32 0, %v132_v13  ;;  %v142_v20 = vrot.slane %v134_v18, %v133_v14  ;;  %v135_v21 = vcombine.high %v134_v18, %v134_v18 }
 0x162   :  { %v182_v25 = vpack.c.bf16 %v3612_v23, %v3610_v22  ;;  %v3708_v24 = vrot.slane %v142_v20, %v675_v19 }
 0x164   :  { %3068 = vmatmul.mubr.msk.bf16.vlgmr.msra.gmra.mrb[0].mxu1 %vm199_vm5, %v182_v25 }
 0x165   :  { %3073 = vmatprep.mubr.msk.bf16.mxu1 %vm3508_vm0, %v3507_v2 }
 0x237   :  { %v237_v27 = vpop.f32.mrb[0].mxu1 }
 0x238   :  { %v3069_v28 = vpop.f32.mrb[1].mxu1  ;;  %v238_v30 = vadd.f32 %v2856_v26, %v237_v27 }
 0x239   :  { %v240_v29 = vpop.f32.mrb[2].mxu1 }
 0x23a   :  { %v241_v31 = vadd.f32 %v2856_v26, %v240_v29  ;;  %v3070_v32 = vpop.f32.mrb[3].mxu1  ;;  %v264_v35 = vpack.c.bf16 %v238_v30, %v238_v30  ;;  %v149_v29 = vrot.slane %v135_v21, %v133_v14 }
 0x23c   :  { %v3351_v33 = vpack.i.bf16 %v241_v31, %v238_v30  ;;  %v265_v34 = vpack.c.bf16 %v241_v31, %v241_v31  ;;  %v3715_v32 = vrot.slane %v149_v29, %v675_v19 }
 0x23e   :  { %3352 = vrot.lane.b32.xlu0 %v3351_v33, %s3509_s19  ;;  %3342 = vrot.lane.b32.xlu1 %v3351_v33, %s3510_s20 }
 0x242   :  { %3347 = vrot.lane.b32.xlu1 %v3351_v33, %s3511_s21  ;;  %323 = vrot.lane.b32.xlu0 %v265_v34, %s3512_s22 }
 0x246   :  { %273 = vrot.lane.b32.xlu1 %v264_v35, %s3512_s22 }
 0x2b0   :  { %v3343_v36 = vpop.permute.xlu1 %3342  ;;  %v3353_v41 = vpop.permute.xlu0 %3352 }
 0x2b1   :  { %v3345_v37 = vunpack.i.h.bf16 %v3343_v36  ;;  %v3344_v38 = vunpack.i.l.bf16 %v3343_v36  ;;  %v3355_v45 = vunpack.i.h.bf16 %v3353_v41  ;;  %v3354_v46 = vunpack.i.l.bf16 %v3353_v41 }
 0x2b3   :  { %v3627_v39 = vpack.c.bf16 %v3345_v37, %v3345_v37  ;;  %v3629_v40 = vpack.c.bf16 %v3344_v38, %v3344_v38  ;;  %v3644_v51 = vpack.c.bf16 %v3355_v45, %v3355_v45  ;;  %v3646_v52 = vpack.c.bf16 %v3354_v46, %v3354_v46 }
 0x2b4   :  { %v3348_v42 = vpop.permute.xlu1 %3347  ;;  %v324_v53 = vpop.permute.xlu0 %323 }
 0x2b5   :  { %v3350_v43 = vunpack.i.h.bf16 %v3348_v42  ;;  %v3349_v44 = vunpack.i.l.bf16 %v3348_v42  ;;  %372 = vrot.lane.b32.xlu1 %v3629_v40, %s3512_s22  ;;  %421 = vrot.lane.b32.xlu0 %v3627_v39, %s3512_s22  ;;  %v329_v54 = vsel %vm275_vm6, %v324_v53, 0 }
 0x2b7   :  { %v3635_v47 = vpack.c.bf16 %v3350_v43, %v3350_v43  ;;  %v3637_v48 = vpack.c.bf16 %v3349_v44, %v3349_v44 }
 0x2b8   :  { %v274_v49 = vpop.permute.xlu1 %273 }
 0x2b9   :  { %v280_v50 = vsel %vm275_vm6, %v274_v49, 0  ;;  %470 = vrot.lane.b32.xlu1 %v3637_v48, %s3512_s22  ;;  %519 = vrot.lane.b32.xlu0 %v3635_v47, %s3512_s22 }
 0x2ba   :  { %3072 = vmatpush3.bf16.xpose.msra.mxu1 %v280_v50 }
 0x2bb   :  { %3077 = vmatprep.subr.bf16.mxu1 %v3507_v2 }
 0x2bd   :  { %568 = vrot.lane.b32.xlu1 %v3646_v52, %s3512_s22  ;;  %617 = vrot.lane.b32.xlu0 %v3644_v51, %s3512_s22 }
 0x2c1   :  { %3074 = vmatmul.mubr.msk.bf16.vlgmr.msra.gmra.mrb[4].mxu1 %vm275_vm6, %v264_v35  ;;  %835 = vrot.lane.b32.xlu1 %v265_v34, %s3513_s23 }
 0x2c2   :  { %787 = vrot.lane.b32.xlu0 %v264_v35, %s3513_s23  ;;  %3078 = vmatpush3.bf16.xpose.msra.mxu1 %v329_v54 }
 0x2c3   :  { %3079 = vmatprep.mubr.msk.bf16.mxu1 %vm3508_vm0, %v3507_v2  ;;  %3083 = vmatprep.subr.bf16.mxu1 %v3507_v2 }
 0x2c9   :  { %3080 = vmatmul.mubr.msk.bf16.vlgmr.msra.gmra.mrb[8].mxu1 %vm275_vm6, %v265_v34 }
 0x2ca   :  { %3085 = vmatprep.mubr.msk.bf16.mxu1 %vm3508_vm0, %v3507_v2 }
 0x327   :  { %v373_v55 = vpop.permute.xlu1 %372  ;;  %v422_v56 = vpop.permute.xlu0 %421 }
 0x328   :  { %v378_v57 = vsel %vm275_vm6, %v373_v55, 0  ;;  %v427_v58 = vsel %vm275_vm6, %v422_v56, 0 }
 0x329   :  { %3084 = vmatpush3.bf16.xpose.msra.mxu1 %v378_v57  ;;  %3090 = vmatpush3.bf16.xpose.msra.mxu0 %v427_v58 }
 0x32a   :  { %3095 = vmatprep.subr.bf16.mxu1 %v3507_v2  ;;  %3101 = vmatprep.subr.bf16.mxu0 %v3507_v2 }
 0x32b   :  { %v471_v59 = vpop.permute.xlu1 %470  ;;  %v520_v60 = vpop.permute.xlu0 %519 }
 0x32c   :  { %v476_v61 = vsel %vm275_vm6, %v471_v59, 0  ;;  %v525_v62 = vsel %vm275_vm6, %v520_v60, 0 }
 0x32f   :  { %v569_v63 = vpop.permute.xlu1 %568  ;;  %v618_v0 = vpop.permute.xlu0 %617 }
 0x330   :  { %3086 = vmatmul.mubr.msk.bf16.vlgmr.msra.gmra.mrb[12].mxu1 %vm275_vm6, %v3629_v40  ;;  %3092 = vmatmul.mubr.msk.bf16.vlgmr.msra.gmra.mrb[4].mxu0 %vm275_vm6, %v3627_v39  ;;  %v574_v1 = vsel %vm275_vm6, %v569_v63, 0  ;;  %v623_v3 = vsel %vm275_vm6, %v618_v0, 0 }
 0x331   :  { %3096 = vmatpush3.bf16.xpose.msra.mxu1 %v476_v61  ;;  %3102 = vmatpush3.bf16.xpose.msra.mxu0 %v525_v62 }
 0x332   :  { %3097 = vmatprep.mubr.msk.bf16.mxu1 %vm3508_vm0, %v3507_v2  ;;  %3103 = vmatprep.mubr.msk.bf16.mxu0 %vm3508_vm0, %v3507_v2 }
 0x333   :  { %3107 = vmatprep.subr.bf16.mxu1 %v3507_v2  ;;  %3113 = vmatprep.subr.bf16.mxu0 %v3507_v2  ;;  %v836_v4 = vpop.permute.xlu1 %835 }
 0x334   :  { %v788_v5 = vpop.permute.xlu0 %787  ;;  %v841_v6 = vsel %vm77_vm1, %v836_v4, 0 }
 0x335   :  { %v793_v7 = vsel %vm77_vm1, %v788_v5, 0 }
 0x338   :  { %3098 = vmatmul.mubr.msk.bf16.vlgmr.msra.gmra.mrb[16].mxu1 %vm275_vm6, %v3637_v48  ;;  %3104 = vmatmul.mubr.msk.bf16.vlgmr.msra.gmra.mrb[8].mxu0 %vm275_vm6, %v3635_v47 }
 0x339   :  { %3108 = vmatpush3.bf16.xpose.msra.mxu1 %v574_v1  ;;  %3114 = vmatpush3.bf16.xpose.msra.mxu0 %v623_v3 }
 0x33a   :  { %3109 = vmatprep.mubr.msk.bf16.mxu1 %vm3508_vm0, %v3507_v2  ;;  %3115 = vmatprep.mubr.msk.bf16.mxu0 %vm3508_vm0, %v3507_v2 }
 0x33b   :  { %3119 = vmatprep.subr.bf16.mxu1 %v3507_v2  ;;  %3125 = vmatprep.subr.bf16.mxu0 %v3507_v2 }
 0x340   :  { %3110 = vmatmul.mubr.msk.bf16.vlgmr.msra.gmra.mrb[20].mxu1 %vm275_vm6, %v3646_v52  ;;  %3116 = vmatmul.mubr.msk.bf16.vlgmr.msra.gmra.mrb[12].mxu0 %vm275_vm6, %v3644_v51 }
 0x341   :  { %3120 = vmatpush3.bf16.msra.mxu1 %v793_v7  ;;  %3126 = vmatpush3.bf16.msra.mxu0 %v841_v6 }
 0x342   :  { %3121 = vmatprep.mubr.msk.bf16.mxu1 %vm3508_vm0, %v3507_v2  ;;  %3127 = vmatprep.mubr.msk.bf16.mxu0 %vm3508_vm0, %v3507_v2 }
 0x343   :  { %3131 = vmatprep.subr.bf16.mxu1 %v3507_v2  ;;  %3137 = vmatprep.subr.bf16.mxu0 %v3507_v2 }
 0x394   :  { %v316_v25 = vpop.f32.mrb[4].mxu1 }
 0x395   :  { %v665_v26 = vmul.f32 0.35355338, %v316_v25  ;;  %v3075_v27 = vpop.f32.mrb[5].mxu1 }
 0x396   :  { %v319_v28 = vpop.f32.mrb[6].mxu1 }
 0x397   :  { %v3076_v30 = vpop.f32.mrb[7].mxu1  ;;  %v3711_v31 = vadd.f32 %v3708_v24, %v665_v26 }
 0x399   :  { %v691_v9 = vsel %vm275_vm6, %v3711_v31, -inf }
 0x39a   :  { %692 = vmax.xlane.f32.xlu1 %v691_v9 }
 0x39c   :  { %v365_v33 = vpop.f32.mrb[8].mxu1 }
 0x39d   :  { %v666_v34 = vmul.f32 0.35355338, %v365_v33  ;;  %v3081_v35 = vpop.f32.mrb[9].mxu1 }
 0x39e   :  { %v368_v36 = vpop.f32.mrb[10].mxu1 }
 0x39f   :  { %v3082_v37 = vpop.f32.mrb[11].mxu1  ;;  %v684_v38 = vadd.f32 %v3715_v32, %v666_v34 }
 0x3a1   :  { %v694_v41 = vsel %vm275_vm6, %v684_v38, -inf }
 0x3a2   :  { %695 = vmax.xlane.f32.xlu0 %v694_v41 }
 0x403   :  { %v414_v42 = vpop.f32.mrb[12].mxu1  ;;  %v463_v43 = vpop.f32.mrb[4].mxu0 }
 0x404   :  { %v667_v44 = vmul.f32 0.35355338, %v414_v42  ;;  %v668_v45 = vmul.f32 0.35355338, %v463_v43  ;;  %v3087_v46 = vpop.f32.mrb[13].mxu1  ;;  %v3093_v49 = vpop.f32.mrb[5].mxu0 }
 0x405   :  { %v417_v50 = vpop.f32.mrb[14].mxu1  ;;  %v466_v53 = vpop.f32.mrb[6].mxu0 }
 0x406   :  { %v3088_v54 = vpop.f32.mrb[15].mxu1  ;;  %v3094_v55 = vpop.f32.mrb[7].mxu0  ;;  %v686_v56 = vadd.f32 %v3715_v32, %v668_v45  ;;  %v685_v57 = vadd.f32 %v3708_v24, %v667_v44 }
 0x408   :  { %v700_v58 = vsel %vm275_vm6, %v686_v56, -inf  ;;  %v697_v59 = vsel %vm275_vm6, %v685_v57, -inf }
 0x409   :  { %701 = vmax.xlane.f32.xlu1 %v700_v58  ;;  %698 = vmax.xlane.f32.xlu0 %v697_v59 }
 0x40b   :  { %v512_v60 = vpop.f32.mrb[16].mxu1  ;;  %v561_v61 = vpop.f32.mrb[8].mxu0 }
 0x40c   :  { %v669_v62 = vmul.f32 0.35355338, %v512_v60  ;;  %v670_v63 = vmul.f32 0.35355338, %v561_v61  ;;  %v3099_v0 = vpop.f32.mrb[17].mxu1  ;;  %v3105_v1 = vpop.f32.mrb[9].mxu0 }
 0x40d   :  { %v515_v3 = vpop.f32.mrb[18].mxu1  ;;  %v564_v4 = vpop.f32.mrb[10].mxu0 }
 0x40e   :  { %v3100_v5 = vpop.f32.mrb[19].mxu1  ;;  %v3106_v6 = vpop.f32.mrb[11].mxu0  ;;  %v688_v7 = vadd.f32 %v3715_v32, %v670_v63  ;;  %v3725_v8 = vadd.f32 %v3708_v24, %v669_v62 }
 0x410   :  { %v706_v10 = vsel %vm275_vm6, %v688_v7, -inf  ;;  %v703_v11 = vsel %vm275_vm6, %v3725_v8, -inf }
 0x411   :  { %707 = vmax.xlane.f32.xlu1 %v706_v10  ;;  %704 = vmax.xlane.f32.xlu0 %v703_v11 }
 0x413   :  { %v610_v12 = vpop.f32.mrb[20].mxu1  ;;  %v659_v13 = vpop.f32.mrb[12].mxu0 }
 0x414   :  { %v671_v14 = vmul.f32 0.35355338, %v610_v12  ;;  %v672_v15 = vmul.f32 0.35355338, %v659_v13  ;;  %v3111_v18 = vpop.f32.mrb[21].mxu1  ;;  %v3117_v19 = vpop.f32.mrb[13].mxu0 }
 0x415   :  { %v613_v20 = vpop.f32.mrb[22].mxu1  ;;  %v662_v21 = vpop.f32.mrb[14].mxu0 }
 0x416   :  { %v3112_v25 = vpop.f32.mrb[23].mxu1  ;;  %v3118_v26 = vpop.f32.mrb[15].mxu0  ;;  %v690_v27 = vadd.f32 %v3715_v32, %v672_v15  ;;  %v689_v28 = vadd.f32 %v3708_v24, %v671_v14 }
 0x418   :  { %v712_v29 = vsel %vm275_vm6, %v690_v27, -inf  ;;  %v709_v30 = vsel %vm275_vm6, %v689_v28, -inf }
 0x419   :  { %713 = vmax.xlane.f32.xlu1 %v712_v29  ;;  %710 = vmax.xlane.f32.xlu0 %v709_v30 }
 0x427   :  { %v693_v9 = vpop.xlane.xlu1 %692 }
 0x428   :  { %v715_v34 = vsub.f32 %v3711_v31, %v693_v9 }
 0x42a   :  { %883 = vrot.lane.b32.xlu1 %v3629_v40, %s3513_s23  ;;  %v723_v36 = vmul.f32 1.442695, %v715_v34 }
 0x42c   :  { %3421 = vpow2.f32 %v723_v36 }
 0x42f   :  { %931 = vrot.lane.b32.xlu0 %v3627_v39, %s3513_s23  ;;  %v696_v33 = vpop.xlane.xlu0 %695 }
 0x430   :  { %v716_v35 = vsub.f32 %v684_v38, %v696_v33 }
 0x432   :  { %v725_v37 = vmul.f32 1.442695, %v716_v35 }
 0x434   :  { %3423 = vpow2.f32 %v725_v37 }
 0x436   :  { %v3422_v41 = vpop.eup %3421 }
 0x437   :  { %v739_v43 = vsel %vm275_vm6, %v3422_v41, 0.0 }
 0x43e   :  { %v3424_v42 = vpop.eup %3423 }
 0x43f   :  { %v742_v44 = vsel %vm275_vm6, %v3424_v42, 0.0 }
 0x44e   :  { %740 = vadd.xlane.f32.xlu0 %v739_v43  ;;  %743 = vadd.xlane.f32.xlu1 %v742_v44 }
 0x45f   :  { %979 = vrot.lane.b32.xlu1 %v3637_v48, %s3513_s23 }
 0x496   :  { %v702_v39 = vpop.xlane.xlu1 %701  ;;  %v699_v40 = vpop.xlane.xlu0 %698 }
 0x497   :  { %v718_v45 = vsub.f32 %v686_v56, %v702_v39  ;;  %v717_v31 = vsub.f32 %v685_v57, %v699_v40 }
 0x499   :  { %v729_v38 = vmul.f32 1.442695, %v718_v45  ;;  %v727_v46 = vmul.f32 1.442695, %v717_v31 }
 0x49b   :  { %3425 = vpow2.f32 %v729_v38 }
 0x49c   :  { %3427 = vpow2.f32 %v727_v46 }
 0x49e   :  { %v708_v49 = vpop.xlane.xlu1 %707  ;;  %v705_v0 = vpop.xlane.xlu0 %704 }
 0x49f   :  { %v720_v50 = vsub.f32 %v688_v7, %v708_v49  ;;  %v719_v1 = vsub.f32 %v3725_v8, %v705_v0 }
 0x4a1   :  { %v733_v53 = vmul.f32 1.442695, %v720_v50  ;;  %v731_v4 = vmul.f32 1.442695, %v719_v1 }
 0x4a3   :  { %3429 = vpow2.f32 %v733_v53 }
 0x4a5   :  { %v3743_v54 = vpop.eup %3425 }
 0x4a6   :  { %v3745_v55 = vpop.eup %3427  ;;  %v714_v58 = vpop.xlane.xlu1 %713  ;;  %v748_v48 = vsel %vm275_vm6, %v3743_v54, 0.0 }
 0x4a7   :  { %v722_v59 = vsub.f32 %v690_v27, %v714_v58  ;;  %749 = vadd.xlane.f32.xlu1 %v748_v48  ;;  %v745_v56 = vsel %vm275_vm6, %v3745_v55, 0.0  ;;  %v711_v3 = vpop.xlane.xlu0 %710 }
 0x4a8   :  { %746 = vadd.xlane.f32.xlu0 %v745_v56  ;;  %v721_v5 = vsub.f32 %v689_v28, %v711_v3 }
 0x4a9   :  { %v737_v57 = vmul.f32 1.442695, %v722_v59 }
 0x4aa   :  { %v735_v6 = vmul.f32 1.442695, %v721_v5  ;;  %v884_v7 = vpop.permute.xlu1 %883 }
 0x4ab   :  { %3431 = vpow2.f32 %v737_v57  ;;  %v932_v10 = vpop.permute.xlu0 %931  ;;  %v889_v26 = vsel %vm77_vm1, %v884_v7, 0 }
 0x4ac   :  { %3433 = vpow2.f32 %v731_v4  ;;  %v937_v25 = vsel %vm77_vm1, %v932_v10, 0 }
 0x4ad   :  { %v3751_v60 = vpop.eup %3429  ;;  %3435 = vpow2.f32 %v735_v6 }
 0x4ae   :  { %v754_v61 = vsel %vm275_vm6, %v3751_v60, 0.0 }
 0x4af   :  { %755 = vadd.xlane.f32.xlu1 %v754_v61 }
 0x4b5   :  { %v3755_v62 = vpop.eup %3431 }
 0x4b6   :  { %v760_v63 = vsel %vm275_vm6, %v3755_v62, 0.0  ;;  %v3764_v11 = vpop.eup %3433 }
 0x4b7   :  { %761 = vadd.xlane.f32.xlu1 %v760_v63  ;;  %v3768_v8 = vpop.eup %3435 }
 0x4be   :  { %1027 = vrot.lane.b32.xlu0 %v3635_v47, %s3513_s23  ;;  %v751_v47 = vsel %vm275_vm6, %v3764_v11, 0.0 }
 0x4c8   :  { %1075 = vrot.lane.b32.xlu1 %v3646_v52, %s3513_s23  ;;  %v757_v52 = vsel %vm275_vm6, %v3768_v8, 0.0 }
 0x4cc   :  { %1208 = vrot.lane.b32.xlu1 %v3596_v16, %s3515_s26 }
 0x4db   :  { %v744_v12 = vpop.xlane.xlu1 %743  ;;  %v741_v13 = vpop.xlane.xlu0 %740 }
 0x4dc   :  { %3437 = vrcp.f32 %v744_v12 }
 0x4dd   :  { %3439 = vrcp.f32 %v741_v13  ;;  %752 = vadd.xlane.f32.xlu0 %v751_v47 }
 0x4df   :  { %v980_v27 = vpop.permute.xlu1 %979 }
 0x4e1   :  { %758 = vadd.xlane.f32.xlu0 %v757_v52 }
 0x4e6   :  { %v3438_v14 = vpop.eup %3437 }
 0x4e7   :  { %v3440_v15 = vpop.eup %3439  ;;  %v772_v18 = vmul.f32 %v3438_v14, %v3424_v42 }
 0x4e8   :  { %v771_v19 = vmul.f32 %v3440_v15, %v3422_v41 }
 0x4e9   :  { %v780_v20 = vpack.c.bf16 %v772_v18, %v772_v18 }
 0x4ea   :  { %v779_v21 = vpack.c.bf16 %v771_v19, %v771_v19 }
 0x4eb   :  { %3128 = vmatmul.mubr.msk.bf16.vlgmr.msra.gmra.mrb[16].mxu0 %vm275_vm6, %v780_v20 }
 0x4ec   :  { %3122 = vmatmul.mubr.msk.bf16.vlgmr.msra.gmra.mrb[24].mxu1 %vm275_vm6, %v779_v21  ;;  %3138 = vmatpush3.bf16.msra.mxu0 %v937_v25 }
 0x4ed   :  { %3132 = vmatpush3.bf16.msra.mxu1 %v889_v26  ;;  %3133 = vmatprep.mubr.msk.bf16.mxu1 %vm3508_vm0, %v3507_v2 }
 0x4ee   :  { %3139 = vmatprep.mubr.msk.bf16.mxu0 %vm3508_vm0, %v3507_v2  ;;  %3143 = vmatprep.subr.bf16.mxu1 %v3507_v2 }
 0x4ef   :  { %3149 = vmatprep.subr.bf16.mxu0 %v3507_v2 }
 0x4f7   :  { %1123 = vrot.lane.b32.xlu0 %v3644_v51, %s3513_s23  ;;  %v985_v51 = vsel %vm77_vm1, %v980_v27, 0 }
 0x534   :  { %v750_v28 = vpop.xlane.xlu1 %749 }
 0x535   :  { %3441 = vrcp.f32 %v750_v28  ;;  %v747_v29 = vpop.xlane.xlu0 %746 }
 0x536   :  { %3443 = vrcp.f32 %v747_v29 }
 0x539   :  { %v1028_v36 = vpop.permute.xlu0 %1027 }
 0x53a   :  { %v1033_v42 = vsel %vm77_vm1, %v1028_v36, 0 }
 0x53c   :  { %v756_v30 = vpop.xlane.xlu1 %755 }
 0x53d   :  { %3445 = vrcp.f32 %v756_v30 }
 0x53f   :  { %v3442_v9 = vpop.eup %3441 }
 0x540   :  { %v3444_v33 = vpop.eup %3443  ;;  %v774_v34 = vmul.f32 %v3442_v9, %v3743_v54 }
 0x541   :  { %v773_v35 = vmul.f32 %v3444_v33, %v3745_v55 }
 0x542   :  { %v782_v37 = vpack.c.bf16 %v774_v34, %v774_v34 }
 0x543   :  { %v781_v41 = vpack.c.bf16 %v773_v35, %v773_v35 }
 0x544   :  { %3140 = vmatmul.mubr.msk.bf16.vlgmr.msra.gmra.mrb[20].mxu0 %vm275_vm6, %v782_v37  ;;  %v762_v40 = vpop.xlane.xlu1 %761 }
 0x545   :  { %3134 = vmatmul.mubr.msk.bf16.vlgmr.msra.gmra.mrb[28].mxu1 %vm275_vm6, %v781_v41  ;;  %3150 = vmatpush3.bf16.msra.mxu0 %v1033_v42  ;;  %3447 = vrcp.f32 %v762_v40 }
 0x546   :  { %3144 = vmatpush3.bf16.msra.mxu1 %v985_v51  ;;  %3151 = vmatprep.mubr.msk.bf16.mxu0 %vm3508_vm0, %v3507_v2 }
 0x547   :  { %v3446_v43 = vpop.eup %3445  ;;  %3161 = vmatprep.subr.bf16.mxu0 %v3507_v2  ;;  %3145 = vmatprep.mubr.msk.bf16.mxu1 %vm3508_vm0, %v3507_v2 }
 0x548   :  { %v776_v44 = vmul.f32 %v3446_v43, %v3751_v60  ;;  %3155 = vmatprep.subr.bf16.mxu1 %v3507_v2  ;;  %v1076_v58 = vpop.permute.xlu1 %1075 }
 0x549   :  { %v1081_v56 = vsel %vm77_vm1, %v1076_v58, 0  ;;  %v2876_v58 = vld [vmem:[%s4198_s5 + $0x1] ss:$0 sm:$0xff] }
 0x54a   :  { %v784_v39 = vpack.c.bf16 %v776_v44, %v776_v44 }
 0x54c   :  { %3152 = vmatmul.mubr.msk.bf16.vlgmr.msra.gmra.mrb[24].mxu0 %vm275_vm6, %v784_v39  ;;  %v1209_v20 = vpop.permute.xlu1 %1208 }
 0x54d   :  { %3163 = vmatprep.mubr.msk.bf16.mxu0 %vm3508_vm0, %v3507_v2 }
 0x54f   :  { %v3448_v31 = vpop.eup %3447 }
 0x550   :  { %v778_v46 = vmul.f32 %v3448_v31, %v3755_v62 }
 0x552   :  { %v786_v54 = vpack.c.bf16 %v778_v46, %v778_v46 }
 0x56a   :  { %v753_v45 = vpop.xlane.xlu0 %752 }
 0x56b   :  { %3449 = vrcp.f32 %v753_v45 }
 0x56e   :  { %v759_v38 = vpop.xlane.xlu0 %758 }
 0x56f   :  { %3451 = vrcp.f32 %v759_v38 }
 0x572   :  { %v1124_v49 = vpop.permute.xlu0 %1123 }
 0x573   :  { %v1129_v50 = vsel %vm77_vm1, %v1124_v49, 0 }
 0x574   :  { %3162 = vmatpush3.bf16.msra.mxu0 %v1129_v50 }
 0x575   :  { %v3450_v53 = vpop.eup %3449  ;;  %3175 = vmatprep.subr.bf16.mxu0 %v3507_v2 }
 0x576   :  { %v775_v55 = vmul.f32 %v3450_v53, %v3764_v11 }
 0x577   :  { %3164 = vmatmul.mubr.msk.bf16.vlgmr.msra.gmra.mrb[28].mxu0 %vm275_vm6, %v786_v54 }
 0x578   :  { %v783_v48 = vpack.c.bf16 %v775_v55, %v775_v55  ;;  %3179 = vmatprep.mubr.msk.bf16.mxu0 %vm3508_vm0, %v3507_v2 }
 0x579   :  { %v3452_v59 = vpop.eup %3451 }
 0x57a   :  { %3146 = vmatmul.mubr.msk.bf16.vlgmr.msra.gmra.mrb[32].mxu1 %vm275_vm6, %v783_v48  ;;  %v777_v57 = vmul.f32 %v3452_v59, %v3768_v8 }
 0x57b   :  { %3156 = vmatpush3.bf16.msra.mxu1 %v1081_v56  ;;  %3157 = vmatprep.mubr.msk.bf16.mxu1 %vm3508_vm0, %v3507_v2 }
 0x57c   :  { %3167 = vmatprep.subr.bf16.mxu1 %v3507_v2  ;;  %v785_v60 = vpack.c.bf16 %v777_v57, %v777_v57 }
 0x582   :  { %3158 = vmatmul.mubr.msk.bf16.vlgmr.msra.gmra.mrb[36].mxu1 %vm275_vm6, %v785_v60 }
 0x583   :  { %3171 = vmatprep.mubr.msk.bf16.mxu1 %vm3508_vm0, %v3507_v2  ;;  %3168 = vmatpush3.bf16.msra.mxu1 %v1209_v20 }
 0x584   :  { %3169 = vmatprep.subr.bf16.mxu1 %v3507_v2 }
 0x5be   :  { %v877_v61 = vpop.f32.mrb[16].mxu0 }
 0x5bf   :  { %v829_v62 = vpop.f32.mrb[24].mxu1  ;;  %v3129_v63 = vpop.f32.mrb[17].mxu0 }
 0x5c0   :  { %v3123_v0 = vpop.f32.mrb[25].mxu1  ;;  %v880_v1 = vpop.f32.mrb[18].mxu0 }
 0x5c1   :  { %v832_v3 = vpop.f32.mrb[26].mxu1  ;;  %v3130_v4 = vpop.f32.mrb[19].mxu0 }
 0x5c2   :  { %v3124_v5 = vpop.f32.mrb[27].mxu1 }
 0x617   :  { %v973_v6 = vpop.f32.mrb[20].mxu0 }
 0x618   :  { %v925_v7 = vpop.f32.mrb[28].mxu1  ;;  %v3141_v10 = vpop.f32.mrb[21].mxu0 }
 0x619   :  { %v3356_v11 = vpack.i.bf16 %v973_v6, %v925_v7  ;;  %v3135_v12 = vpop.f32.mrb[29].mxu1  ;;  %v976_v13 = vpop.f32.mrb[22].mxu0  ;;  %v3409_v7 = vld [vmem:[%s4200_s4] sm:$0xff]   ;;  %v3410_v10 = vld [vmem:[%s4200_s4 + $0x8] sm:$0xff]  }
 0x61a   :  { %v928_v47 = vpop.f32.mrb[30].mxu1  ;;  %v3142_v8 = vpop.f32.mrb[23].mxu0 }
 0x61b   :  { %3357 = vrot.lane.b32.xlu0 %v3356_v11, %s3516_s27  ;;  %v3136_v52 = vpop.f32.mrb[31].mxu1 }
 0x61f   :  { %v1069_v14 = vpop.f32.mrb[24].mxu0 }
 0x620   :  { %v3153_v15 = vpop.f32.mrb[25].mxu0 }
 0x621   :  { %v1072_v18 = vpop.f32.mrb[26].mxu0 }
 0x622   :  { %v3154_v19 = vpop.f32.mrb[27].mxu0 }
 0x64a   :  { %v1165_v16 = vpop.f32.mrb[28].mxu0 }
 0x64b   :  { %v3165_v21 = vpop.f32.mrb[29].mxu0 }
 0x64c   :  { %v1168_v25 = vpop.f32.mrb[30].mxu0 }
 0x64d   :  { %v1021_v26 = vpop.f32.mrb[32].mxu1  ;;  %v3166_v27 = vpop.f32.mrb[31].mxu0 }
 0x64e   :  { %v3361_v28 = vpack.i.bf16 %v1069_v14, %v1021_v26  ;;  %v3147_v29 = vpop.f32.mrb[33].mxu1 }
 0x64f   :  { %v1024_v30 = vpop.f32.mrb[34].mxu1  ;;  %v2878_v29 = vld [vmem:[%s4198_s5 + $0x4] ss:$0 sm:$0xff] }
 0x650   :  { %3362 = vrot.lane.b32.xlu1 %v3361_v28, %s3517_s28  ;;  %v3148_v9 = vpop.f32.mrb[35].mxu1 }
 0x654   :  { %1210 = vrot.lane.b32.xlu1 %v3603_v17, %s3515_s26 }
 0x655   :  { %v1117_v33 = vpop.f32.mrb[36].mxu1 }
 0x656   :  { %v3366_v34 = vpack.i.bf16 %v1165_v16, %v1117_v33  ;;  %v3159_v35 = vpop.f32.mrb[37].mxu1 }
 0x657   :  { %v1120_v36 = vpop.f32.mrb[38].mxu1  ;;  %v2879_v35 = vld [vmem:[%s4198_s5 + $0x5] ss:$0 sm:$0xff] }
 0x658   :  { %v3160_v37 = vpop.f32.mrb[39].mxu1  ;;  %3367 = vrot.lane.b32.xlu0 %v3366_v34, %s3518_s29 }
 0x68d   :  { %v3358_v42 = vpop.permute.xlu0 %3357 }
 0x68e   :  { %v3360_v43 = vunpack.i.h.bf16 %v3358_v42  ;;  %v3359_v44 = vunpack.i.l.bf16 %v3358_v42 }
 0x690   :  { %v1196_v45 = vsel %vm275_vm6, %v877_v61, %v3360_v43  ;;  %v1195_v31 = vsel %vm275_vm6, %v829_v62, %v3359_v44  ;;  %v3412_v43 = vld [vmem:[%s4200_s4 + $0x18] sm:$0xff]   ;;  %v2880_v44 = vld [vmem:[%s4198_s5 + $0x2] ss:$0 sm:$0xff] }
 0x6c2   :  { %v3363_v41 = vpop.permute.xlu1 %3362 }
 0x6c3   :  { %v3365_v39 = vunpack.i.h.bf16 %v3363_v41  ;;  %v3364_v40 = vunpack.i.l.bf16 %v3363_v41 }
 0x6c5   :  { %v1198_v49 = vsel %vm1197_vm8, %v1195_v31, %v3364_v40  ;;  %v1199_v50 = vsel %vm1197_vm8, %v1196_v45, %v3365_v39 }
 0x6c6   :  { %v1211_v51 = vpop.permute.xlu1 %1210 }
 0x6c7   :  { %3170 = vmatpush3.bf16.msra.mxu1 %v1211_v51  ;;  %v3411_v51 = vld [vmem:[%s4200_s4 + $0x10] sm:$0xff]  }
 0x6c8   :  { %3183 = vmatprep.subr.bf16.mxu1 %v3507_v2 }
 0x6ca   :  { %v3368_v17 = vpop.permute.xlu0 %3367 }
 0x6cb   :  { %v3370_v38 = vunpack.i.h.bf16 %v3368_v17  ;;  %v3369_v46 = vunpack.i.l.bf16 %v3368_v17 }
 0x6cd   :  { %v1201_v53 = vsel %vm1200_vm9, %v1198_v49, %v3369_v46  ;;  %v1202_v54 = vsel %vm1200_vm9, %v1199_v50, %v3370_v38 }
 0x6ce   :  { %v1203_v55 = vpack.c.bf16 %v1202_v54, %v1201_v53  ;;  %v2884_v53 = vld [vmem:[%s4198_s5 + $0x3] ss:$0 sm:$0xff] }
 0x6d0   :  { %3172 = vmatmul.mubr.msk.bf16.vlgmr.msra.gmra.mrb[40].mxu1 %vm199_vm5, %v1203_v55 }
 0x6d1   :  { %3191 = vmatprep.mubr.msk.bf16.mxu1 %vm3508_vm0, %v3507_v2  ;;  %3184 = vmatpush3.bf16.msra.mxu1 %v3409_v7 }
 0x6d2   :  { %3185 = vmatprep.subr.bf16.mxu1 %v3507_v2 }
 0x6d5   :  { %3186 = vmatpush3.bf16.msra.mxu1 %v3410_v10 }
 0x6d6   :  { %3187 = vmatprep.subr.bf16.mxu1 %v3507_v2 }
 0x6d9   :  { %3188 = vmatpush3.bf16.msra.mxu1 %v3411_v51 }
 0x6da   :  { %3189 = vmatprep.subr.bf16.mxu1 %v3507_v2 }
 0x6dd   :  { %3190 = vmatpush3.bf16.msra.mxu1 %v3412_v43 }
 0x6de   :  { %3209 = vmatprep.subr.bf16.mxu1 %v3507_v2 }
 0x7a3   :  { %v1251_v48 = vpop.f32.mrb[40].mxu1 }
 0x7a4   :  { %v1252_v59 = vadd.f32 %v2876_v58, %v1251_v48  ;;  %v3173_v56 = vpop.f32.mrb[41].mxu1 }
 0x7a5   :  { %v1254_v57 = vpop.f32.mrb[42].mxu1 }
 0x7a6   :  { %v1258_v60 = vadd.f32 %v1252_v59, %v3610_v22  ;;  %v1255_v61 = vadd.f32 %v2876_v58, %v1254_v57  ;;  %v3174_v62 = vpop.f32.mrb[43].mxu1  ;;  %v3407_v22 = vld [vmem:[%s4196_s3 + $0x4] ss:$8 sps:$4 sm:$0xff]  }
 0x7a7   :  { %3176 = vmatpush3.bf16.msra.mxu0 %v3407_v22 }
 0x7a8   :  { %v1259_v63 = vadd.f32 %v1255_v61, %v3612_v23  ;;  %v1260_v0 = vsel %vm199_vm5, %v1258_v60, 0.0  ;;  %v1269_v1 = vmul.f32 %v1258_v60, %v1258_v60  ;;  %v3408_v23 = vld [vmem:[%s4196_s3 + $0x14] ss:$8 sps:$4 sm:$0xff]   ;;  %3177 = vmatprep.subr.bf16.mxu0 %v3507_v2 }
 0x7a9   :  { %1261 = vadd.xlane.f32.xlu0 %v1260_v0 }
 0x7aa   :  { %v1263_v3 = vsel %vm199_vm5, %v1259_v63, 0.0  ;;  %v1271_v4 = vsel %vm199_vm5, %v1269_v1, 0.0  ;;  %v1270_v5 = vmul.f32 %v1259_v63, %v1259_v63 }
 0x7ab   :  { %1264 = vadd.xlane.f32.xlu1 %v1263_v3  ;;  %3178 = vmatpush3.bf16.msra.mxu0 %v3408_v23 }
 0x7ac   :  { %v1274_v6 = vsel %vm199_vm5, %v1270_v5, 0.0  ;;  %3195 = vmatprep.subr.bf16.mxu0 %v3507_v2  ;;  %v3898_v5 = vld [vmem:[%s4196_s3 + $0x30] ss:$8 sps:$4 sm:$0xff]  }
 0x7ad   :  { %1272 = vadd.xlane.f32.xlu0 %v1271_v4  ;;  %v3892_v4 = vld [vmem:[%s4196_s3 + $0x20] ss:$8 sps:$4 sm:$0xff]  }
 0x7b1   :  { %1275 = vadd.xlane.f32.xlu0 %v1274_v6 }
 0x836   :  { %v1262_v11 = vpop.xlane.xlu0 %1261 }
 0x837   :  { %v1267_v12 = vmul.f32 0.03125, %v1262_v11 }
 0x838   :  { %v1265_v13 = vpop.xlane.xlu1 %1264 }
 0x839   :  { %v1279_v8 = vmul.f32 %v1267_v12, %v1267_v12  ;;  %v1268_v52 = vmul.f32 0.03125, %v1265_v13  ;;  %v1283_v26 = vsub.f32 %v1258_v60, %v1267_v12 }
 0x83a   :  { %v1273_v47 = vpop.xlane.xlu0 %1272 }
 0x83b   :  { %v1277_v14 = vmul.f32 0.03125, %v1273_v47  ;;  %v1280_v19 = vmul.f32 %v1268_v52, %v1268_v52  ;;  %v1284_v30 = vsub.f32 %v1259_v63, %v1268_v52 }
 0x83d   :  { %v1281_v15 = vsub.f32 %v1277_v14, %v1279_v8 }
 0x83e   :  { %v1276_v18 = vpop.xlane.xlu0 %1275 }
 0x83f   :  { %v1285_v20 = vadd.f32 1e-05, %v1281_v15  ;;  %v1278_v16 = vmul.f32 0.03125, %v1276_v18 }
 0x841   :  { %3453 = vrsqrt.f32 %v1285_v20  ;;  %v1282_v21 = vsub.f32 %v1278_v16, %v1280_v19  ;;  %v2890_v16 = vld [vmem:[%s4198_s5 + $0x6] ss:$0 sm:$0xff] }
 0x843   :  { %v1286_v25 = vadd.f32 1e-05, %v1282_v21 }
 0x845   :  { %3455 = vrsqrt.f32 %v1286_v25 }
 0x84b   :  { %v3454_v27 = vpop.eup %3453 }
 0x84c   :  { %v1289_v28 = vmul.f32 %v3454_v27, %v1283_v26 }
 0x84e   :  { %v1295_v34 = vmul.f32 %v2878_v29, %v1289_v28 }
 0x84f   :  { %v3456_v9 = vpop.eup %3455 }
 0x850   :  { %v1290_v33 = vmul.f32 %v3456_v9, %v1284_v30  ;;  %v1301_v37 = vadd.f32 %v2879_v35, %v1295_v34 }
 0x852   :  { %v1296_v36 = vmul.f32 %v2878_v29, %v1290_v33  ;;  %v2891_v29 = vld [vmem:[%s4198_s5 + $0x7] ss:$0 sm:$0xff] }
 0x854   :  { %v1302_v41 = vadd.f32 %v2879_v35, %v1296_v36  ;;  %v2916_v35 = vld [vmem:[%s4198_s5 + $0x8] ss:$0 sm:$0xff] }
 0x856   :  { %v1303_v42 = vpack.c.bf16 %v1302_v41, %v1301_v37 }
 0x858   :  { %3180 = vmatmul.mubr.msk.bf16.vlgmr.msra.gmra.mrb[32].mxu0 %vm199_vm5, %v1303_v42 }
 0x859   :  { %3199 = vmatprep.mubr.msk.bf16.mxu0 %vm3508_vm0, %v3507_v2  ;;  %3196 = vmatpush3.bf16.msra.mxu0 %v3892_v4 }
 0x85a   :  { %3197 = vmatprep.subr.bf16.mxu0 %v3507_v2 }
 0x85d   :  { %3198 = vmatpush3.bf16.msra.mxu0 %v3898_v5 }
 0x85e   :  { %3203 = vmatprep.subr.bf16.mxu0 %v3507_v2 }
 0x92b   :  { %v1357_v39 = vpop.f32.mrb[32].mxu0 }
 0x92c   :  { %v1358_v40 = vadd.f32 %v2880_v44, %v1357_v39  ;;  %v3181_v17 = vpop.f32.mrb[33].mxu0 }
 0x92d   :  { %v1360_v45 = vpop.f32.mrb[34].mxu0 }
 0x92e   :  { %v1361_v31 = vadd.f32 %v2880_v44, %v1360_v45  ;;  %v3182_v38 = vpop.f32.mrb[35].mxu0  ;;  %v1364_v46 = vmax.f32 %v1358_v40, 0.0 }
 0x930   :  { %v1365_v49 = vmax.f32 %v1361_v31, 0.0 }
 0x932   :  { %v1366_v50 = vpack.c.bf16 %v1365_v49, %v1364_v46 }
 0x934   :  { %3192 = vmatmul.mubr.msk.bf16.vlgmr.msra.gmra.mrb[44].mxu1 %vm1395_vm10, %v1366_v50 }
 0x935   :  { %3211 = vmatprep.mubr.msk.bf16.mxu1 %vm3508_vm0, %v3507_v2 }
 0xa07   :  { %v1433_v54 = vpop.f32.mrb[44].mxu1 }
 0xa08   :  { %v1434_v55 = vadd.f32 %v2884_v53, %v1433_v54  ;;  %v3193_v58 = vpop.f32.mrb[45].mxu1 }
 0xa09   :  { %v1436_v48 = vpop.f32.mrb[46].mxu1 }
 0xa0a   :  { %v1440_v59 = vadd.f32 %v1434_v55, %v1301_v37  ;;  %v1437_v56 = vadd.f32 %v2884_v53, %v1436_v48  ;;  %v3194_v57 = vpop.f32.mrb[47].mxu1 }
 0xa0c   :  { %v1441_v60 = vadd.f32 %v1437_v56, %v1302_v41  ;;  %v1442_v61 = vsel %vm199_vm5, %v1440_v59, 0.0  ;;  %v1450_v62 = vmul.f32 %v1440_v59, %v1440_v59 }
 0xa0d   :  { %1443 = vadd.xlane.f32.xlu1 %v1442_v61 }
 0xa0e   :  { %v1445_v63 = vsel %vm199_vm5, %v1441_v60, 0.0  ;;  %v1451_v0 = vmul.f32 %v1441_v60, %v1441_v60  ;;  %v1452_v1 = vsel %vm199_vm5, %v1450_v62, 0.0 }
 0xa0f   :  { %1446 = vadd.xlane.f32.xlu0 %v1445_v63 }
 0xa10   :  { %v1455_v3 = vsel %vm199_vm5, %v1451_v0, 0.0 }
 0xa11   :  { %1453 = vadd.xlane.f32.xlu1 %v1452_v1 }
 0xa13   :  { %1456 = vadd.xlane.f32.xlu0 %v1455_v3 }
 0xa9a   :  { %v1444_v6 = vpop.xlane.xlu1 %1443 }
 0xa9b   :  { %v1448_v22 = vmul.f32 0.03125, %v1444_v6 }
 0xa9c   :  { %v1447_v23 = vpop.xlane.xlu0 %1446 }
 0xa9d   :  { %v1449_v7 = vmul.f32 0.03125, %v1447_v23  ;;  %v1460_v11 = vmul.f32 %v1448_v22, %v1448_v22  ;;  %v1464_v19 = vsub.f32 %v1440_v59, %v1448_v22 }
 0xa9e   :  { %v1454_v10 = vpop.xlane.xlu1 %1453 }
 0xa9f   :  { %v1458_v12 = vmul.f32 0.03125, %v1454_v10  ;;  %v1461_v47 = vmul.f32 %v1449_v7, %v1449_v7  ;;  %v1465_v21 = vsub.f32 %v1441_v60, %v1449_v7 }
 0xaa0   :  { %v1457_v13 = vpop.xlane.xlu0 %1456 }
 0xaa1   :  { %v1462_v8 = vsub.f32 %v1458_v12, %v1460_v11  ;;  %v1459_v52 = vmul.f32 0.03125, %v1457_v13 }
 0xaa3   :  { %v1466_v14 = vadd.f32 1e-05, %v1462_v8  ;;  %v1463_v15 = vsub.f32 %v1459_v52, %v1461_v47 }
 0xaa5   :  { %3457 = vrsqrt.f32 %v1466_v14  ;;  %v1467_v18 = vadd.f32 1e-05, %v1463_v15 }
 0xaa7   :  { %3459 = vrsqrt.f32 %v1467_v18 }
 0xaaf   :  { %v3458_v20 = vpop.eup %3457 }
 0xab0   :  { %v1470_v25 = vmul.f32 %v3458_v20, %v1464_v19 }
 0xab1   :  { %v3460_v26 = vpop.eup %3459 }
 0xab2   :  { %v1471_v27 = vmul.f32 %v3460_v26, %v1465_v21  ;;  %v1476_v28 = vmul.f32 %v2890_v16, %v1470_v25 }
 0xab4   :  { %v1477_v30 = vmul.f32 %v2890_v16, %v1471_v27  ;;  %v3909_v9 = vadd.f32 %v2891_v29, %v1476_v28 }
 0xab6   :  { %v3911_v33 = vadd.f32 %v2891_v29, %v1477_v30 }
 0xab8   :  { %v1511_v34 = vpack.c.bf16 %v3911_v33, %v3909_v9 }
 0xaba   :  { %3200 = vmatmul.mubr.msk.bf16.vlgmr.msra.gmra.mrb[36].mxu0 %vm199_vm5, %v1511_v34 }
 0xabb   :  { %3205 = vmatprep.mubr.msk.bf16.mxu0 %vm3508_vm0, %v3507_v2 }
 0xb8d   :  { %v1565_v36 = vpop.f32.mrb[36].mxu0 }
 0xb8e   :  { %v3201_v37 = vpop.f32.mrb[37].mxu0  ;;  %v1566_v42 = vadd.f32 %v2916_v35, %v1565_v36 }
 0xb8f   :  { %v1568_v41 = vpop.f32.mrb[38].mxu0 }
 0xb90   :  { %v1569_v51 = vadd.f32 %v2916_v35, %v1568_v41  ;;  %v3202_v43 = vpop.f32.mrb[39].mxu0  ;;  %v1592_v40 = vpack.c.bf16 %v1566_v42, %v1566_v42 }
 0xb92   :  { %v3376_v44 = vpack.i.bf16 %v1569_v51, %v1566_v42  ;;  %v1593_v39 = vpack.c.bf16 %v1569_v51, %v1569_v51 }
 0xb94   :  { %3377 = vrot.lane.b32.xlu0 %v3376_v44, %s3511_s21  ;;  %3372 = vrot.lane.b32.xlu1 %v3376_v44, %s3510_s20 }
 0xb98   :  { %3382 = vrot.lane.b32.xlu1 %v3376_v44, %s3509_s19  ;;  %1650 = vrot.lane.b32.xlu0 %v1593_v39, %s3512_s22 }
 0xb9c   :  { %1601 = vrot.lane.b32.xlu1 %v1592_v40, %s3512_s22 }
 0xc06   :  { %v3378_v17 = vpop.permute.xlu0 %3377  ;;  %v3373_v45 = vpop.permute.xlu1 %3372 }
 0xc07   :  { %v3375_v31 = vunpack.i.h.bf16 %v3373_v45  ;;  %v3374_v38 = vunpack.i.l.bf16 %v3373_v45  ;;  %v3380_v46 = vunpack.i.h.bf16 %v3378_v17  ;;  %v3379_v49 = vunpack.i.l.bf16 %v3378_v17 }
 0xc09   :  { %v3926_v50 = vpack.c.bf16 %v3375_v31, %v3375_v31  ;;  %v3928_v53 = vpack.c.bf16 %v3374_v38, %v3374_v38  ;;  %v3935_v48 = vpack.c.bf16 %v3380_v46, %v3380_v46  ;;  %v3937_v59 = vpack.c.bf16 %v3379_v49, %v3379_v49 }
 0xc0a   :  { %v3383_v54 = vpop.permute.xlu1 %3382  ;;  %v1651_v55 = vpop.permute.xlu0 %1650 }
 0xc0b   :  { %v1656_v58 = vsel %vm275_vm6, %v1651_v55, 0  ;;  %1699 = vrot.lane.b32.xlu1 %v3928_v53, %s3512_s22  ;;  %1748 = vrot.lane.b32.xlu0 %v3926_v50, %s3512_s22  ;;  %v3385_v56 = vunpack.i.h.bf16 %v3383_v54  ;;  %v3384_v57 = vunpack.i.l.bf16 %v3383_v54 }
 0xc0c   :  { %3210 = vmatpush3.bf16.xpose.msra.mxu1 %v1656_v58 }
 0xc0d   :  { %3221 = vmatprep.subr.bf16.mxu1 %v3507_v2  ;;  %v3945_v62 = vpack.c.bf16 %v3385_v56, %v3385_v56  ;;  %v3947_v63 = vpack.c.bf16 %v3384_v57, %v3384_v57 }
 0xc0e   :  { %v1602_v60 = vpop.permute.xlu1 %1601 }
 0xc0f   :  { %v1607_v61 = vsel %vm275_vm6, %v1602_v60, 0  ;;  %1797 = vrot.lane.b32.xlu1 %v3937_v59, %s3512_s22  ;;  %1846 = vrot.lane.b32.xlu0 %v3935_v48, %s3512_s22 }
 0xc10   :  { %3204 = vmatpush3.bf16.xpose.msra.mxu0 %v1607_v61 }
 0xc11   :  { %3215 = vmatprep.subr.bf16.mxu0 %v3507_v2 }
 0xc13   :  { %1895 = vrot.lane.b32.xlu1 %v3947_v63, %s3512_s22  ;;  %1944 = vrot.lane.b32.xlu0 %v3945_v62, %s3512_s22 }
 0xc14   :  { %3212 = vmatmul.mubr.msk.bf16.vlgmr.msra.gmra.mrb[48].mxu1 %vm275_vm6, %v1593_v39 }
 0xc15   :  { %3223 = vmatprep.mubr.msk.bf16.mxu1 %vm3508_vm0, %v3507_v2 }
 0xc17   :  { %3206 = vmatmul.mubr.msk.bf16.vlgmr.msra.gmra.mrb[40].mxu0 %vm275_vm6, %v1592_v40  ;;  %2152 = vrot.lane.b32.xlu1 %v1593_v39, %s3513_s23 }
 0xc18   :  { %2104 = vrot.lane.b32.xlu0 %v1592_v40, %s3513_s23  ;;  %3217 = vmatprep.mubr.msk.bf16.mxu0 %vm3508_vm0, %v3507_v2 }
 0xc7d   :  { %v1700_v0 = vpop.permute.xlu1 %1699  ;;  %v1749_v1 = vpop.permute.xlu0 %1748 }
 0xc7e   :  { %v1705_v3 = vsel %vm275_vm6, %v1700_v0, 0  ;;  %v1754_v6 = vsel %vm275_vm6, %v1749_v1, 0 }
 0xc7f   :  { %3216 = vmatpush3.bf16.xpose.msra.mxu0 %v1705_v3  ;;  %3222 = vmatpush3.bf16.xpose.msra.mxu1 %v1754_v6 }
 0xc80   :  { %3227 = vmatprep.subr.bf16.mxu0 %v3507_v2  ;;  %3233 = vmatprep.subr.bf16.mxu1 %v3507_v2 }
 0xc81   :  { %v1798_v22 = vpop.permute.xlu1 %1797  ;;  %v1847_v23 = vpop.permute.xlu0 %1846 }
 0xc82   :  { %v1803_v7 = vsel %vm275_vm6, %v1798_v22, 0  ;;  %v1852_v10 = vsel %vm275_vm6, %v1847_v23, 0 }
 0xc85   :  { %v1896_v11 = vpop.permute.xlu1 %1895  ;;  %v1945_v12 = vpop.permute.xlu0 %1944 }
 0xc86   :  { %3218 = vmatmul.mubr.msk.bf16.vlgmr.msra.gmra.mrb[44].mxu0 %vm275_vm6, %v3928_v53  ;;  %3224 = vmatmul.mubr.msk.bf16.vlgmr.msra.gmra.mrb[52].mxu1 %vm275_vm6, %v3926_v50  ;;  %v1901_v13 = vsel %vm275_vm6, %v1896_v11, 0  ;;  %v1950_v47 = vsel %vm275_vm6, %v1945_v12, 0 }
 0xc87   :  { %3228 = vmatpush3.bf16.xpose.msra.mxu0 %v1803_v7  ;;  %3234 = vmatpush3.bf16.xpose.msra.mxu1 %v1852_v10 }
 0xc88   :  { %3229 = vmatprep.mubr.msk.bf16.mxu0 %vm3508_vm0, %v3507_v2  ;;  %3235 = vmatprep.mubr.msk.bf16.mxu1 %vm3508_vm0, %v3507_v2 }
 0xc89   :  { %3239 = vmatprep.subr.bf16.mxu0 %v3507_v2  ;;  %3245 = vmatprep.subr.bf16.mxu1 %v3507_v2  ;;  %v2153_v8 = vpop.permute.xlu1 %2152 }
 0xc8a   :  { %v2105_v52 = vpop.permute.xlu0 %2104  ;;  %v2158_v14 = vsel %vm77_vm1, %v2153_v8, 0 }
 0xc8b   :  { %v2110_v15 = vsel %vm77_vm1, %v2105_v52, 0 }
 0xc8e   :  { %3230 = vmatmul.mubr.msk.bf16.vlgmr.msra.gmra.mrb[48].mxu0 %vm275_vm6, %v3937_v59  ;;  %3236 = vmatmul.mubr.msk.bf16.vlgmr.msra.gmra.mrb[56].mxu1 %vm275_vm6, %v3935_v48 }
 0xc8f   :  { %3240 = vmatpush3.bf16.xpose.msra.mxu0 %v1901_v13  ;;  %3246 = vmatpush3.bf16.xpose.msra.mxu1 %v1950_v47 }
 0xc90   :  { %3241 = vmatprep.mubr.msk.bf16.mxu0 %vm3508_vm0, %v3507_v2  ;;  %3247 = vmatprep.mubr.msk.bf16.mxu1 %vm3508_vm0, %v3507_v2 }
 0xc91   :  { %3251 = vmatprep.subr.bf16.mxu0 %v3507_v2  ;;  %3257 = vmatprep.subr.bf16.mxu1 %v3507_v2 }
 0xc96   :  { %3242 = vmatmul.mubr.msk.bf16.vlgmr.msra.gmra.mrb[52].mxu0 %vm275_vm6, %v3947_v63  ;;  %3248 = vmatmul.mubr.msk.bf16.vlgmr.msra.gmra.mrb[60].mxu1 %vm275_vm6, %v3945_v62 }
 0xc97   :  { %3252 = vmatpush3.bf16.msra.mxu0 %v2110_v15  ;;  %3258 = vmatpush3.bf16.msra.mxu1 %v2158_v14 }
 0xc98   :  { %3253 = vmatprep.mubr.msk.bf16.mxu0 %vm3508_vm0, %v3507_v2  ;;  %3259 = vmatprep.mubr.msk.bf16.mxu1 %vm3508_vm0, %v3507_v2 }
 0xc99   :  { %3263 = vmatprep.subr.bf16.mxu0 %v3507_v2  ;;  %3269 = vmatprep.subr.bf16.mxu1 %v3507_v2 }
 0xce7   :  { %v1692_v18 = vpop.f32.mrb[48].mxu1 }
 0xce8   :  { %v1993_v19 = vmul.f32 0.35355338, %v1692_v18  ;;  %v3213_v20 = vpop.f32.mrb[49].mxu1 }
 0xce9   :  { %v1695_v16 = vpop.f32.mrb[50].mxu1 }
 0xcea   :  { %v3214_v21 = vpop.f32.mrb[51].mxu1  ;;  %v1643_v25 = vpop.f32.mrb[40].mxu0  ;;  %v4003_v26 = vadd.f32 %v1993_v19, %v3715_v32 }
 0xceb   :  { %v1992_v27 = vmul.f32 0.35355338, %v1643_v25  ;;  %v3207_v28 = vpop.f32.mrb[41].mxu0 }
 0xcec   :  { %v1646_v29 = vpop.f32.mrb[42].mxu0  ;;  %v2011_v30 = vsel %vm275_vm6, %v4003_v26, -inf }
 0xced   :  { %2012 = vmax.xlane.f32.xlu0 %v2011_v30  ;;  %v3208_v34 = vpop.f32.mrb[43].mxu0  ;;  %v2000_v35 = vadd.f32 %v1992_v27, %v3708_v24 }
 0xcef   :  { %v2008_v36 = vsel %vm275_vm6, %v2000_v35, -inf }
 0xcf0   :  { %2009 = vmax.xlane.f32.xlu1 %v2008_v36 }
 0xd59   :  { %v1741_v37 = vpop.f32.mrb[44].mxu0  ;;  %v1790_v41 = vpop.f32.mrb[52].mxu1 }
 0xd5a   :  { %v1994_v42 = vmul.f32 0.35355338, %v1741_v37  ;;  %v1995_v51 = vmul.f32 0.35355338, %v1790_v41  ;;  %v3219_v43 = vpop.f32.mrb[45].mxu0  ;;  %v3225_v44 = vpop.f32.mrb[53].mxu1 }
 0xd5b   :  { %v1744_v39 = vpop.f32.mrb[46].mxu0  ;;  %v1793_v40 = vpop.f32.mrb[54].mxu1 }
 0xd5c   :  { %v3220_v17 = vpop.f32.mrb[47].mxu0  ;;  %v3226_v45 = vpop.f32.mrb[55].mxu1  ;;  %v2002_v31 = vadd.f32 %v1994_v42, %v3708_v24  ;;  %v2003_v38 = vadd.f32 %v1995_v51, %v3715_v32 }
 0xd5e   :  { %v2014_v46 = vsel %vm275_vm6, %v2002_v31, -inf  ;;  %v2017_v49 = vsel %vm275_vm6, %v2003_v38, -inf }
 0xd5f   :  { %2015 = vmax.xlane.f32.xlu0 %v2014_v46  ;;  %2018 = vmax.xlane.f32.xlu1 %v2017_v49 }
 0xd61   :  { %v1839_v54 = vpop.f32.mrb[48].mxu0  ;;  %v1888_v55 = vpop.f32.mrb[56].mxu1 }
 0xd62   :  { %v1996_v58 = vmul.f32 0.35355338, %v1839_v54  ;;  %v1997_v56 = vmul.f32 0.35355338, %v1888_v55  ;;  %v3231_v57 = vpop.f32.mrb[49].mxu0  ;;  %v3237_v60 = vpop.f32.mrb[57].mxu1 }
 0xd63   :  { %v1842_v61 = vpop.f32.mrb[50].mxu0  ;;  %v1891_v0 = vpop.f32.mrb[58].mxu1 }
 0xd64   :  { %v3232_v1 = vpop.f32.mrb[51].mxu0  ;;  %v3238_v3 = vpop.f32.mrb[59].mxu1  ;;  %v4014_v6 = vadd.f32 %v1996_v58, %v3708_v24  ;;  %v2005_v22 = vadd.f32 %v1997_v56, %v3715_v32 }
 0xd66   :  { %v2020_v23 = vsel %vm275_vm6, %v4014_v6, -inf  ;;  %v2023_v7 = vsel %vm275_vm6, %v2005_v22, -inf }
 0xd67   :  { %2021 = vmax.xlane.f32.xlu0 %v2020_v23  ;;  %2024 = vmax.xlane.f32.xlu1 %v2023_v7 }
 0xd69   :  { %v1937_v10 = vpop.f32.mrb[52].mxu0  ;;  %v1986_v11 = vpop.f32.mrb[60].mxu1 }
 0xd6a   :  { %v1998_v12 = vmul.f32 0.35355338, %v1937_v10  ;;  %v1999_v13 = vmul.f32 0.35355338, %v1986_v11  ;;  %v3243_v47 = vpop.f32.mrb[53].mxu0  ;;  %v3249_v8 = vpop.f32.mrb[61].mxu1 }
 0xd6b   :  { %v1940_v52 = vpop.f32.mrb[54].mxu0  ;;  %v1989_v14 = vpop.f32.mrb[62].mxu1 }
 0xd6c   :  { %v3244_v15 = vpop.f32.mrb[55].mxu0  ;;  %v3250_v18 = vpop.f32.mrb[63].mxu1  ;;  %v2006_v19 = vadd.f32 %v1998_v12, %v3708_v24  ;;  %v2007_v20 = vadd.f32 %v1999_v13, %v3715_v32 }
 0xd6e   :  { %v2026_v16 = vsel %vm275_vm6, %v2006_v19, -inf  ;;  %v2029_v21 = vsel %vm275_vm6, %v2007_v20, -inf }
 0xd6f   :  { %2027 = vmax.xlane.f32.xlu0 %v2026_v16  ;;  %2030 = vmax.xlane.f32.xlu1 %v2029_v21 }
 0xd7a   :  { %v2013_v25 = vpop.xlane.xlu0 %2012 }
 0xd7b   :  { %v2033_v28 = vsub.f32 %v4003_v26, %v2013_v25 }
 0xd7d   :  { %v2010_v27 = vpop.xlane.xlu1 %2009  ;;  %v2042_v24 = vmul.f32 1.442695, %v2033_v28 }
 0xd7e   :  { %v2032_v29 = vsub.f32 %v2000_v35, %v2010_v27 }
 0xd7f   :  { %3461 = vpow2.f32 %v2042_v24 }
 0xd80   :  { %2200 = vrot.lane.b32.xlu1 %v3928_v53, %s3513_s23  ;;  %v2040_v30 = vmul.f32 1.442695, %v2032_v29 }
 0xd82   :  { %3463 = vpow2.f32 %v2040_v30 }
 0xd85   :  { %2248 = vrot.lane.b32.xlu0 %v3926_v50, %s3513_s23 }
 0xd89   :  { %v3462_v32 = vpop.eup %3461 }
 0xd8a   :  { %v2059_v37 = vsel %vm275_vm6, %v3462_v32, 0.0 }
 0xd8c   :  { %v3464_v34 = vpop.eup %3463 }
 0xd8d   :  { %v2056_v36 = vsel %vm275_vm6, %v3464_v34, 0.0 }
 0xda4   :  { %2057 = vadd.xlane.f32.xlu0 %v2056_v36  ;;  %2060 = vadd.xlane.f32.xlu1 %v2059_v37 }
 0xdb5   :  { %2296 = vrot.lane.b32.xlu1 %v3937_v59, %s3513_s23 }
 0xdec   :  { %v2016_v50 = vpop.xlane.xlu0 %2015  ;;  %v2019_v53 = vpop.xlane.xlu1 %2018 }
 0xded   :  { %v2034_v41 = vsub.f32 %v2002_v31, %v2016_v50  ;;  %v2035_v26 = vsub.f32 %v2003_v38, %v2019_v53 }
 0xdef   :  { %v2044_v35 = vmul.f32 1.442695, %v2034_v41  ;;  %v2046_v42 = vmul.f32 1.442695, %v2035_v26 }
 0xdf1   :  { %3465 = vpow2.f32 %v2044_v35 }
 0xdf2   :  { %3467 = vpow2.f32 %v2046_v42 }
 0xdf4   :  { %v2025_v51 = vpop.xlane.xlu1 %2024  ;;  %v2022_v58 = vpop.xlane.xlu0 %2021 }
 0xdf5   :  { %v2037_v43 = vsub.f32 %v2005_v22, %v2025_v51  ;;  %v2036_v56 = vsub.f32 %v4014_v6, %v2022_v58 }
 0xdf7   :  { %v2050_v44 = vmul.f32 1.442695, %v2037_v43  ;;  %v2048_v60 = vmul.f32 1.442695, %v2036_v56 }
 0xdf9   :  { %3469 = vpow2.f32 %v2050_v44 }
 0xdfb   :  { %v4033_v39 = vpop.eup %3465 }
 0xdfc   :  { %v4035_v40 = vpop.eup %3467  ;;  %v2031_v17 = vpop.xlane.xlu1 %2030  ;;  %v2062_v59 = vsel %vm275_vm6, %v4033_v39, 0.0 }
 0xdfd   :  { %v2039_v45 = vsub.f32 %v2007_v20, %v2031_v17  ;;  %2063 = vadd.xlane.f32.xlu0 %v2062_v59  ;;  %v2065_v31 = vsel %vm275_vm6, %v4035_v40, 0.0  ;;  %v2028_v57 = vpop.xlane.xlu0 %2027 }
 0xdfe   :  { %2066 = vadd.xlane.f32.xlu1 %v2065_v31  ;;  %v2038_v61 = vsub.f32 %v2006_v19, %v2028_v57 }
 0xdff   :  { %v2054_v38 = vmul.f32 1.442695, %v2039_v45 }
 0xe00   :  { %v2052_v0 = vmul.f32 1.442695, %v2038_v61  ;;  %v2201_v3 = vpop.permute.xlu1 %2200 }
 0xe01   :  { %3471 = vpow2.f32 %v2054_v38  ;;  %v2249_v1 = vpop.permute.xlu0 %2248  ;;  %v2206_v8 = vsel %vm77_vm1, %v2201_v3, 0 }
 0xe02   :  { %3473 = vpow2.f32 %v2048_v60  ;;  %v2254_v52 = vsel %vm77_vm1, %v2249_v1, 0 }
 0xe03   :  { %v4041_v46 = vpop.eup %3469  ;;  %3475 = vpow2.f32 %v2052_v0 }
 0xe04   :  { %v2071_v49 = vsel %vm275_vm6, %v4041_v46, 0.0 }
 0xe05   :  { %2072 = vadd.xlane.f32.xlu1 %v2071_v49 }
 0xe0b   :  { %v4045_v54 = vpop.eup %3471 }
 0xe0c   :  { %v2077_v55 = vsel %vm275_vm6, %v4045_v54, 0.0  ;;  %v4056_v22 = vpop.eup %3473 }
 0xe0d   :  { %2078 = vadd.xlane.f32.xlu1 %v2077_v55  ;;  %v2068_v6 = vsel %vm275_vm6, %v4056_v22, 0.0  ;;  %v4060_v7 = vpop.eup %3475 }
 0xe13   :  { %2344 = vrot.lane.b32.xlu0 %v3935_v48, %s3513_s23 }
 0xe1e   :  { %2392 = vrot.lane.b32.xlu1 %v3947_v63, %s3513_s23 }
 0xe22   :  { %2523 = vrot.lane.b32.xlu1 %v3892_v4, %s3515_s26  ;;  %v2074_v4 = vsel %vm275_vm6, %v4060_v7, 0.0 }
 0xe31   :  { %v2058_v48 = vpop.xlane.xlu0 %2057  ;;  %v2061_v23 = vpop.xlane.xlu1 %2060 }
 0xe32   :  { %3477 = vrcp.f32 %v2058_v48  ;;  %2069 = vadd.xlane.f32.xlu0 %v2068_v6 }
 0xe33   :  { %3479 = vrcp.f32 %v2061_v23 }
 0xe35   :  { %v2297_v14 = vpop.permute.xlu1 %2296 }
 0xe36   :  { %2075 = vadd.xlane.f32.xlu0 %v2074_v4  ;;  %v2302_v24 = vsel %vm77_vm1, %v2297_v14, 0 }
 0xe3c   :  { %v3478_v63 = vpop.eup %3477 }
 0xe3d   :  { %v3480_v10 = vpop.eup %3479  ;;  %v2088_v11 = vmul.f32 %v3478_v63, %v3464_v34 }
 0xe3e   :  { %v2089_v12 = vmul.f32 %v3480_v10, %v3462_v32 }
 0xe3f   :  { %v2096_v13 = vpack.c.bf16 %v2088_v11, %v2088_v11 }
 0xe40   :  { %v2097_v47 = vpack.c.bf16 %v2089_v12, %v2089_v12 }
 0xe41   :  { %3254 = vmatmul.mubr.msk.bf16.vlgmr.msra.gmra.mrb[56].mxu0 %vm275_vm6, %v2096_v13 }
 0xe42   :  { %3260 = vmatmul.mubr.msk.bf16.vlgmr.msra.gmra.mrb[64].mxu1 %vm275_vm6, %v2097_v47  ;;  %3264 = vmatpush3.bf16.msra.mxu0 %v2206_v8 }
 0xe43   :  { %3270 = vmatpush3.bf16.msra.mxu1 %v2254_v52  ;;  %3265 = vmatprep.mubr.msk.bf16.mxu0 %vm3508_vm0, %v3507_v2 }
 0xe44   :  { %3271 = vmatprep.mubr.msk.bf16.mxu1 %vm3508_vm0, %v3507_v2  ;;  %3275 = vmatprep.subr.bf16.mxu0 %v3507_v2 }
 0xe45   :  { %3281 = vmatprep.subr.bf16.mxu1 %v3507_v2 }
 0xe4c   :  { %2440 = vrot.lane.b32.xlu0 %v3945_v62, %s3513_s23 }
 0xe8a   :  { %v2064_v15 = vpop.xlane.xlu0 %2063 }
 0xe8b   :  { %3481 = vrcp.f32 %v2064_v15  ;;  %v2067_v18 = vpop.xlane.xlu1 %2066 }
 0xe8c   :  { %3483 = vrcp.f32 %v2067_v18 }
 0xe8e   :  { %v2345_v27 = vpop.permute.xlu0 %2344 }
 0xe8f   :  { %v2350_v62 = vsel %vm77_vm1, %v2345_v27, 0 }
 0xe92   :  { %v2073_v19 = vpop.xlane.xlu1 %2072 }
 0xe93   :  { %3485 = vrcp.f32 %v2073_v19 }
 0xe95   :  { %v3482_v20 = vpop.eup %3481 }
 0xe96   :  { %v3484_v16 = vpop.eup %3483  ;;  %v2090_v21 = vmul.f32 %v3482_v20, %v4033_v39 }
 0xe97   :  { %v2091_v25 = vmul.f32 %v3484_v16, %v4035_v40 }
 0xe98   :  { %v2098_v28 = vpack.c.bf16 %v2090_v21, %v2090_v21 }
 0xe99   :  { %v2099_v29 = vpack.c.bf16 %v2091_v25, %v2091_v25 }
 0xe9a   :  { %3266 = vmatmul.mubr.msk.bf16.vlgmr.msra.gmra.mrb[60].mxu0 %vm275_vm6, %v2098_v28  ;;  %v2079_v36 = vpop.xlane.xlu1 %2078 }
 0xe9b   :  { %3272 = vmatmul.mubr.msk.bf16.vlgmr.msra.gmra.mrb[68].mxu1 %vm275_vm6, %v2099_v29  ;;  %3276 = vmatpush3.bf16.msra.mxu0 %v2302_v24  ;;  %3487 = vrcp.f32 %v2079_v36 }
 0xe9c   :  { %3282 = vmatpush3.bf16.msra.mxu1 %v2350_v62  ;;  %3283 = vmatprep.mubr.msk.bf16.mxu1 %vm3508_vm0, %v3507_v2 }
 0xe9d   :  { %3293 = vmatprep.subr.bf16.mxu1 %v3507_v2  ;;  %3277 = vmatprep.mubr.msk.bf16.mxu0 %vm3508_vm0, %v3507_v2  ;;  %v3486_v30 = vpop.eup %3485 }
 0xe9e   :  { %3287 = vmatprep.subr.bf16.mxu0 %v3507_v2  ;;  %v2093_v32 = vmul.f32 %v3486_v30, %v4041_v46  ;;  %v2393_v44 = vpop.permute.xlu1 %2392 }
 0xe9f   :  { %v2398_v17 = vsel %vm77_vm1, %v2393_v44, 0 }
 0xea0   :  { %v2101_v34 = vpack.c.bf16 %v2093_v32, %v2093_v32 }
 0xea2   :  { %v2524_v57 = vpop.permute.xlu1 %2523 }
 0xea3   :  { %3284 = vmatmul.mubr.msk.bf16.vlgmr.msra.gmra.mrb[72].mxu1 %vm275_vm6, %v2101_v34 }
 0xea4   :  { %3295 = vmatprep.mubr.msk.bf16.mxu1 %vm3508_vm0, %v3507_v2 }
 0xea5   :  { %v3488_v50 = vpop.eup %3487 }
 0xea6   :  { %v2095_v41 = vmul.f32 %v3488_v50, %v4045_v54 }
 0xea8   :  { %v2103_v51 = vpack.c.bf16 %v2095_v41, %v2095_v41 }
 0xebf   :  { %v2070_v37 = vpop.xlane.xlu0 %2069 }
 0xec0   :  { %3489 = vrcp.f32 %v2070_v37 }
 0xec3   :  { %v2076_v53 = vpop.xlane.xlu0 %2075 }
 0xec4   :  { %3491 = vrcp.f32 %v2076_v53 }
 0xec7   :  { %v2441_v26 = vpop.permute.xlu0 %2440 }
 0xec8   :  { %v2446_v35 = vsel %vm77_vm1, %v2441_v26, 0 }
 0xec9   :  { %3294 = vmatpush3.bf16.msra.mxu1 %v2446_v35 }
 0xeca   :  { %v3490_v42 = vpop.eup %3489  ;;  %3307 = vmatprep.subr.bf16.mxu1 %v3507_v2 }
 0xecb   :  { %v2092_v43 = vmul.f32 %v3490_v42, %v4056_v22 }
 0xecc   :  { %3296 = vmatmul.mubr.msk.bf16.vlgmr.msra.gmra.mrb[76].mxu1 %vm275_vm6, %v2103_v51  ;;  %v2936_v51 = vld [vmem:[%s4198_s5 + $0x9] ss:$0 sm:$0xff] }
 0xecd   :  { %v2100_v39 = vpack.c.bf16 %v2092_v43, %v2092_v43  ;;  %3311 = vmatprep.mubr.msk.bf16.mxu1 %vm3508_vm0, %v3507_v2 }
 0xece   :  { %v3492_v40 = vpop.eup %3491 }
 0xecf   :  { %3278 = vmatmul.mubr.msk.bf16.vlgmr.msra.gmra.mrb[64].mxu0 %vm275_vm6, %v2100_v39  ;;  %v2094_v59 = vmul.f32 %v3492_v40, %v4060_v7 }
 0xed0   :  { %3288 = vmatpush3.bf16.msra.mxu0 %v2398_v17  ;;  %3289 = vmatprep.mubr.msk.bf16.mxu0 %vm3508_vm0, %v3507_v2 }
 0xed1   :  { %3299 = vmatprep.subr.bf16.mxu0 %v3507_v2  ;;  %v2102_v45 = vpack.c.bf16 %v2094_v59, %v2094_v59 }
 0xed7   :  { %3290 = vmatmul.mubr.msk.bf16.vlgmr.msra.gmra.mrb[68].mxu0 %vm275_vm6, %v2102_v45 }
 0xed8   :  { %3303 = vmatprep.mubr.msk.bf16.mxu0 %vm3508_vm0, %v3507_v2  ;;  %3300 = vmatpush3.bf16.msra.mxu0 %v2524_v57  ;;  %v3418_v57 = vld [vmem:[%s4200_s4 + $0x28] sm:$0xff]  }
 0xed9   :  { %3301 = vmatprep.subr.bf16.mxu0 %v3507_v2 }
 0xf14   :  { %v2146_v31 = vpop.f32.mrb[56].mxu0 }
 0xf15   :  { %v2194_v38 = vpop.f32.mrb[64].mxu1  ;;  %v3255_v46 = vpop.f32.mrb[57].mxu0 }
 0xf16   :  { %v3261_v49 = vpop.f32.mrb[65].mxu1  ;;  %v2149_v54 = vpop.f32.mrb[58].mxu0 }
 0xf17   :  { %v2197_v55 = vpop.f32.mrb[66].mxu1  ;;  %v3256_v58 = vpop.f32.mrb[59].mxu0 }
 0xf18   :  { %v3262_v56 = vpop.f32.mrb[67].mxu1 }
 0xf19   :  { %v3417_v56 = vld [vmem:[%s4200_s4 + $0x20] sm:$0xff]  }
 0xf6d   :  { %v2242_v60 = vpop.f32.mrb[60].mxu0 }
 0xf6e   :  { %v2290_v61 = vpop.f32.mrb[68].mxu1  ;;  %v3267_v0 = vpop.f32.mrb[61].mxu0 }
 0xf6f   :  { %v3386_v1 = vpack.i.bf16 %v2290_v61, %v2242_v60  ;;  %v3273_v3 = vpop.f32.mrb[69].mxu1  ;;  %v2245_v22 = vpop.f32.mrb[62].mxu0 }
 0xf70   :  { %v2293_v48 = vpop.f32.mrb[70].mxu1  ;;  %v3268_v23 = vpop.f32.mrb[63].mxu0 }
 0xf71   :  { %3387 = vrot.lane.b32.xlu0 %v3386_v1, %s3516_s27  ;;  %v3274_v6 = vpop.f32.mrb[71].mxu1 }
 0xf76   :  { %v2386_v7 = vpop.f32.mrb[72].mxu1 }
 0xf77   :  { %v3285_v4 = vpop.f32.mrb[73].mxu1 }
 0xf78   :  { %v2389_v63 = vpop.f32.mrb[74].mxu1 }
 0xf79   :  { %v3286_v10 = vpop.f32.mrb[75].mxu1 }
 0xf9f   :  { %v2482_v11 = vpop.f32.mrb[76].mxu1 }
 0xfa0   :  { %v3297_v12 = vpop.f32.mrb[77].mxu1 }
 0xfa1   :  { %v2485_v13 = vpop.f32.mrb[78].mxu1 }
 0xfa2   :  { %v2338_v47 = vpop.f32.mrb[64].mxu0  ;;  %v3298_v8 = vpop.f32.mrb[79].mxu1 }
 0xfa3   :  { %v3391_v52 = vpack.i.bf16 %v2386_v7, %v2338_v47  ;;  %v3279_v14 = vpop.f32.mrb[65].mxu0  ;;  %v2938_v8 = vld [vmem:[%s4198_s5 + $0xc] ss:$0 sm:$0xff] }
 0xfa4   :  { %v2341_v15 = vpop.f32.mrb[66].mxu0 }
 0xfa5   :  { %v3280_v18 = vpop.f32.mrb[67].mxu0  ;;  %3392 = vrot.lane.b32.xlu1 %v3391_v52, %s3517_s28 }
 0xfa9   :  { %2525 = vrot.lane.b32.xlu1 %v3898_v5, %s3515_s26 }
 0xfaa   :  { %v2434_v19 = vpop.f32.mrb[68].mxu0 }
 0xfab   :  { %v3396_v20 = vpack.i.bf16 %v2482_v11, %v2434_v19  ;;  %v3291_v16 = vpop.f32.mrb[69].mxu0  ;;  %v2939_v19 = vld [vmem:[%s4198_s5 + $0xd] ss:$0 sm:$0xff] }
 0xfac   :  { %v2437_v21 = vpop.f32.mrb[70].mxu0 }
 0xfad   :  { %v3292_v25 = vpop.f32.mrb[71].mxu0  ;;  %3397 = vrot.lane.b32.xlu0 %v3396_v20, %s3518_s29 }
 0xfe3   :  { %v3388_v28 = vpop.permute.xlu0 %3387 }
 0xfe4   :  { %v3390_v24 = vunpack.i.h.bf16 %v3388_v28  ;;  %v3389_v62 = vunpack.i.l.bf16 %v3388_v28  ;;  %v3420_v28 = vld [vmem:[%s4200_s4 + $0x38] sm:$0xff]  }
 0xfe6   :  { %v2513_v5 = vsel %vm275_vm6, %v2194_v38, %v3390_v24  ;;  %v2512_v36 = vsel %vm275_vm6, %v2146_v31, %v3389_v62 }
0x1017   :  { %v3393_v27 = vpop.permute.xlu1 %3392 }
0x1018   :  { %v3395_v30 = vunpack.i.h.bf16 %v3393_v27  ;;  %v3394_v32 = vunpack.i.l.bf16 %v3393_v27  ;;  %v3419_v27 = vld [vmem:[%s4200_s4 + $0x30] sm:$0xff]  }
0x101a   :  { %v2515_v53 = vsel %vm1197_vm8, %v2513_v5, %v3395_v30  ;;  %v2514_v41 = vsel %vm1197_vm8, %v2512_v36, %v3394_v32 }
0x101b   :  { %v2526_v29 = vpop.permute.xlu1 %2525 }
0x101c   :  { %3302 = vmatpush3.bf16.msra.mxu0 %v2526_v29  ;;  %v2940_v29 = vld [vmem:[%s4198_s5 + $0xa] ss:$0 sm:$0xff] }
0x101d   :  { %3315 = vmatprep.subr.bf16.mxu0 %v3507_v2 }
0x101f   :  { %v3398_v34 = vpop.permute.xlu0 %3397 }
0x1020   :  { %v3400_v37 = vunpack.i.h.bf16 %v3398_v34  ;;  %v3399_v50 = vunpack.i.l.bf16 %v3398_v34 }
0x1022   :  { %v2517_v26 = vsel %vm1200_vm9, %v2515_v53, %v3400_v37  ;;  %v2516_v35 = vsel %vm1200_vm9, %v2514_v41, %v3399_v50  ;;  %v2944_v53 = vld [vmem:[%s4198_s5 + $0xb] ss:$0 sm:$0xff] }
0x1023   :  { %v2518_v42 = vpack.c.bf16 %v2517_v26, %v2516_v35 }
0x1025   :  { %3304 = vmatmul.mubr.msk.bf16.vlgmr.msra.gmra.mrb[72].mxu0 %vm199_vm5, %v2518_v42 }
0x1026   :  { %3323 = vmatprep.mubr.msk.bf16.mxu0 %vm3508_vm0, %v3507_v2  ;;  %3316 = vmatpush3.bf16.msra.mxu0 %v3417_v56 }
0x1027   :  { %3317 = vmatprep.subr.bf16.mxu0 %v3507_v2 }
0x102a   :  { %3318 = vmatpush3.bf16.msra.mxu0 %v3418_v57 }
0x102b   :  { %3319 = vmatprep.subr.bf16.mxu0 %v3507_v2 }
0x102e   :  { %3320 = vmatpush3.bf16.msra.mxu0 %v3419_v27 }
0x102f   :  { %3321 = vmatprep.subr.bf16.mxu0 %v3507_v2 }
0x1032   :  { %3322 = vmatpush3.bf16.msra.mxu0 %v3420_v28 }
0x10f8   :  { %v2566_v43 = vpop.f32.mrb[72].mxu0 }
0x10f9   :  { %v2567_v44 = vadd.f32 %v2936_v51, %v2566_v43  ;;  %v3305_v39 = vpop.f32.mrb[73].mxu0 }
0x10fa   :  { %v2569_v40 = vpop.f32.mrb[74].mxu0 }
0x10fb   :  { %v2573_v17 = vadd.f32 %v2567_v44, %v3909_v9  ;;  %v2570_v59 = vadd.f32 %v2936_v51, %v2569_v40  ;;  %v3306_v45 = vpop.f32.mrb[75].mxu0  ;;  %v3415_v9 = vld [vmem:[%s4196_s3 + $0x24] ss:$8 sps:$4 sm:$0xff]  }
0x10fc   :  { %3308 = vmatpush3.bf16.msra.mxu1 %v3415_v9 }
0x10fd   :  { %v2574_v31 = vadd.f32 %v2570_v59, %v3911_v33  ;;  %v2575_v38 = vsel %vm199_vm5, %v2573_v17, 0.0  ;;  %v2583_v46 = vmul.f32 %v2573_v17, %v2573_v17  ;;  %v3416_v33 = vld [vmem:[%s4196_s3 + $0x34] ss:$8 sps:$4 sm:$0xff]   ;;  %3309 = vmatprep.subr.bf16.mxu1 %v3507_v2 }
0x10fe   :  { %2576 = vadd.xlane.f32.xlu0 %v2575_v38 }
0x10ff   :  { %v2578_v49 = vsel %vm199_vm5, %v2574_v31, 0.0  ;;  %v2585_v54 = vsel %vm199_vm5, %v2583_v46, 0.0  ;;  %v2584_v55 = vmul.f32 %v2574_v31, %v2574_v31 }
0x1100   :  { %2579 = vadd.xlane.f32.xlu1 %v2578_v49  ;;  %3310 = vmatpush3.bf16.msra.mxu1 %v3416_v33 }
0x1101   :  { %v2588_v58 = vsel %vm199_vm5, %v2584_v55, 0.0 }
0x1102   :  { %2586 = vadd.xlane.f32.xlu0 %v2585_v54 }
0x1106   :  { %2589 = vadd.xlane.f32.xlu0 %v2588_v58 }
0x118b   :  { %v2577_v60 = vpop.xlane.xlu0 %2576 }
0x118c   :  { %v2581_v61 = vmul.f32 0.03125, %v2577_v60 }
0x118d   :  { %v2580_v0 = vpop.xlane.xlu1 %2579 }
0x118e   :  { %v2593_v3 = vmul.f32 %v2581_v61, %v2581_v61  ;;  %v2582_v22 = vmul.f32 0.03125, %v2580_v0  ;;  %v2597_v12 = vsub.f32 %v2573_v17, %v2581_v61 }
0x118f   :  { %v2587_v1 = vpop.xlane.xlu0 %2586 }
0x1190   :  { %v2591_v48 = vmul.f32 0.03125, %v2587_v1  ;;  %v2594_v7 = vmul.f32 %v2582_v22, %v2582_v22  ;;  %v2598_v52 = vsub.f32 %v2574_v31, %v2582_v22  ;;  %v3505_v31 = vld [vmem:[%s4199_s0] sm:$0x3] }
0x1191   :  { %vm150_vm11 = vcmp.ne.s32.totalorder %v3505_v31, 0 }
0x1192   :  { %v2595_v23 = vsub.f32 %v2591_v48, %v2593_v3  ;;  %v2855_v46 = vsel %vm150_vm11, 1.0, %v3507_v2 }
0x1193   :  { %v2590_v6 = vpop.xlane.xlu0 %2589  ;;  %v154_v54 = vsel %vm153_vm12, %v2855_v46, 0.0 }
0x1194   :  { %v2599_v4 = vadd.f32 1e-05, %v2595_v23  ;;  %v2592_v63 = vmul.f32 0.03125, %v2590_v6 }
0x1196   :  { %3493 = vrsqrt.f32 %v2599_v4  ;;  %v2596_v10 = vsub.f32 %v2592_v63, %v2594_v7  ;;  %v2950_v4 = vld [vmem:[%s4198_s5 + $0xe] ss:$0 sm:$0xff] }
0x1198   :  { %v2600_v11 = vadd.f32 1e-05, %v2596_v10 }
0x119a   :  { %3495 = vrsqrt.f32 %v2600_v11 }
0x11a0   :  { %v3494_v13 = vpop.eup %3493 }
0x11a1   :  { %v2603_v47 = vmul.f32 %v3494_v13, %v2597_v12  ;;  %v2951_v13 = vld [vmem:[%s4198_s5 + $0xf] ss:$0 sm:$0xff] }
0x11a3   :  { %v2609_v18 = vmul.f32 %v2938_v8, %v2603_v47 }
0x11a4   :  { %v3496_v14 = vpop.eup %3495 }
0x11a5   :  { %v2604_v15 = vmul.f32 %v3496_v14, %v2598_v52  ;;  %v2615_v16 = vadd.f32 %v2939_v19, %v2609_v18 }
0x11a7   :  { %v2610_v20 = vmul.f32 %v2938_v8, %v2604_v15 }
0x11a9   :  { %v2616_v21 = vadd.f32 %v2939_v19, %v2610_v20 }
0x11ab   :  { %v2617_v25 = vpack.c.bf16 %v2616_v21, %v2615_v16 }
0x11ad   :  { %3312 = vmatmul.mubr.msk.bf16.vlgmr.msra.gmra.mrb[80].mxu1 %vm199_vm5, %v2617_v25 }
0x1280   :  { %v2671_v24 = vpop.f32.mrb[80].mxu1 }
0x1281   :  { %v2672_v62 = vadd.f32 %v2940_v29, %v2671_v24  ;;  %v3313_v30 = vpop.f32.mrb[81].mxu1 }
0x1282   :  { %v2674_v32 = vpop.f32.mrb[82].mxu1 }
0x1283   :  { %v2675_v34 = vadd.f32 %v2940_v29, %v2674_v32  ;;  %v3314_v5 = vpop.f32.mrb[83].mxu1  ;;  %v2678_v36 = vmax.f32 %v2672_v62, 0.0 }
0x1285   :  { %v2679_v37 = vmax.f32 %v2675_v34, 0.0 }
0x1287   :  { %v2680_v50 = vpack.c.bf16 %v2679_v37, %v2678_v36 }
0x1289   :  { %3324 = vmatmul.mubr.msk.bf16.vlgmr.msra.gmra.mrb[76].mxu0 %vm1395_vm10, %v2680_v50 }
0x135c   :  { %v2746_v41 = vpop.f32.mrb[76].mxu0 }
0x135d   :  { %v2747_v26 = vadd.f32 %v2944_v53, %v2746_v41  ;;  %v3325_v35 = vpop.f32.mrb[77].mxu0  ;;  %v2952_v41 = vld [vmem:[%s4197_s6 + $0x10] ss:$0 sm:$0xff] }
0x135e   :  { %v2749_v42 = vpop.f32.mrb[78].mxu0 }
0x135f   :  { %v2753_v51 = vadd.f32 %v2747_v26, %v2615_v16  ;;  %v2750_v43 = vadd.f32 %v2944_v53, %v2749_v42  ;;  %v3326_v44 = vpop.f32.mrb[79].mxu0 }
0x1360   :  { %v2953_v44 = vld [vmem:[%s4197_s6 + $0x11] ss:$0 sm:$0xff] }
0x1361   :  { %v2754_v39 = vadd.f32 %v2750_v43, %v2616_v21  ;;  %v2755_v40 = vsel %vm199_vm5, %v2753_v51, 0.0  ;;  %v2763_v17 = vmul.f32 %v2753_v51, %v2753_v51 }
0x1362   :  { %2756 = vadd.xlane.f32.xlu0 %v2755_v40 }
0x1363   :  { %v2758_v59 = vsel %vm199_vm5, %v2754_v39, 0.0  ;;  %v2764_v45 = vmul.f32 %v2754_v39, %v2754_v39  ;;  %v2765_v38 = vsel %vm199_vm5, %v2763_v17, 0.0 }
0x1364   :  { %2759 = vadd.xlane.f32.xlu1 %v2758_v59 }
0x1365   :  { %v2768_v49 = vsel %vm199_vm5, %v2764_v45, 0.0 }
0x1366   :  { %2766 = vadd.xlane.f32.xlu0 %v2765_v38 }
0x1368   :  { %2769 = vadd.xlane.f32.xlu1 %v2768_v49 }
0x136c   :  { %155 = vadd.xlane.f32.xlu1 %v154_v54 }
0x13ef   :  { %v2757_v55 = vpop.xlane.xlu0 %2756 }
0x13f0   :  { %v2761_v58 = vmul.f32 0.03125, %v2757_v55 }
0x13f1   :  { %v2760_v9 = vpop.xlane.xlu1 %2759 }
0x13f2   :  { %v2762_v33 = vmul.f32 0.03125, %v2760_v9  ;;  %v2773_v57 = vmul.f32 %v2761_v58, %v2761_v58  ;;  %v2777_v6 = vsub.f32 %v2753_v51, %v2761_v58 }
0x13f3   :  { %v2767_v56 = vpop.xlane.xlu0 %2766 }
0x13f4   :  { %v2771_v60 = vmul.f32 0.03125, %v2767_v56  ;;  %v2774_v0 = vmul.f32 %v2762_v33, %v2762_v33  ;;  %v2778_v63 = vsub.f32 %v2754_v39, %v2762_v33 }
0x13f5   :  { %v2770_v61 = vpop.xlane.xlu1 %2769 }
0x13f6   :  { %v2775_v1 = vsub.f32 %v2771_v60, %v2773_v57  ;;  %v2772_v3 = vmul.f32 0.03125, %v2770_v61 }
0x13f8   :  { %v2779_v22 = vadd.f32 1e-05, %v2775_v1  ;;  %v2776_v48 = vsub.f32 %v2772_v3, %v2774_v0 }
0x13f9   :  { %v156_v23 = vpop.xlane.xlu1 %155 }
0x13fa   :  { %3497 = vrsqrt.f32 %v2779_v22  ;;  %v2780_v2 = vadd.f32 1e-05, %v2776_v48  ;;  %v157_v11 = vmax.f32 %v156_v23, 1.0 }
0x13fc   :  { %3499 = vrsqrt.f32 %v2780_v2  ;;  %v2812_v14 = vrot.slane %v157_v11, 1 }
0x13fd   :  { %3501 = vrcp.f32 %v157_v11 }
0x13fe   :  { %3503 = vrcp.f32 %v2812_v14 }
0x1404   :  { %v3498_v7 = vpop.eup %3497 }
0x1405   :  { %v2783_v10 = vmul.f32 %v3498_v7, %v2777_v6 }
0x1406   :  { %v3500_v12 = vpop.eup %3499 }
0x1407   :  { %v2789_v47 = vmul.f32 %v2950_v4, %v2783_v10  ;;  %v2784_v8 = vmul.f32 %v3500_v12, %v2778_v63  ;;  %v3502_v32 = vpop.eup %3501 }
0x1408   :  { %v3504_v36 = vpop.eup %3503 }
0x1409   :  { %v2790_v52 = vmul.f32 %v2950_v4, %v2784_v8  ;;  %v2795_v15 = vadd.f32 %v2951_v13, %v2789_v47 }
0x140b   :  { %v2796_v18 = vadd.f32 %v2951_v13, %v2790_v52  ;;  %v2797_v19 = vsel %vm199_vm5, %v2795_v15, 0.0 }
0x140c   :  { %v2798_v20 = vrot.slane %v2797_v19, 4 }
0x140d   :  { %v2804_v16 = vsel %vm199_vm5, %v2796_v18, 0.0 }
0x140e   :  { %v2799_v21 = vadd.f32 %v2798_v20, %v2797_v19  ;;  %v2805_v25 = vrot.slane %v2804_v16, 4 }
0x1410   :  { %v2800_v27 = vrot.slane %v2799_v21, 2  ;;  %v2806_v28 = vadd.f32 %v2805_v25, %v2804_v16 }
0x1412   :  { %v2801_v29 = vadd.f32 %v2800_v27, %v2799_v21  ;;  %v2807_v24 = vrot.slane %v2806_v28, 2 }
0x1414   :  { %v2802_v62 = vrot.slane %v2801_v29, 1  ;;  %v2808_v30 = vadd.f32 %v2807_v24, %v2806_v28 }
0x1416   :  { %v2803_v34 = vadd.f32 %v2802_v62, %v2801_v29  ;;  %v2809_v5 = vrot.slane %v2808_v30, 1 }
0x1418   :  { %v2810_v37 = vadd.f32 %v2809_v5, %v2808_v30  ;;  %v2816_v50 = vmul.f32 %v3502_v32, %v2803_v34 }
0x141a   :  { %v2818_v53 = vmul.f32 %v3504_v36, %v2810_v37  ;;  %v2825_v35 = vmul.f32 %v2952_v41, %v2816_v50 }
0x141c   :  { %v2826_v26 = vmul.f32 %v2952_v41, %v2818_v53 }
0x141e   :  { %v2829_v42 = vrot.slane %v2826_v26, 7 }
0x1420   :  { %v2831_v51 = vsel %vm2830_vm13, %v2829_v42, %v2825_v35 }
0x1421   :  { %v2834_v43 = vsel %vm2833_vm14, %v2831_v51, 0.0 }
0x1422   :  { %2835 = vadd.xlane.f32.xlu0 %v2834_v43 }
0x14af   :  { %v2836_v39 = vpop.xlane.xlu0 %2835 }
0x14b0   :  { %v2841_v40 = vadd.f32 %v2953_v44, %v2836_v39 }
0x14b2   :  { %2843 = vst.msk [vmem:[%s4201_s7] sm:$0x3] %vm2842_vm15, %v2841_v40 }

</bundles_post_ra>
